<compile_context>
chip_gen: v6e
topology: v6e:2x2x1
jax: 0.10.0
libtpu: 0.0.40
codegen_flags: <defaults>
</compile_context>

<pallas_src>
import functools

import jax
import jax.numpy as jnp
from jax.experimental import pallas as pl
from jax.experimental.pallas import tpu as pltpu

LEAKY_SLOPE = 0.01   # PyTorch nn.LeakyReLU default
HID = 128            # padded hidden width (>= widest hidden layer)


def _leaky_relu(z):
    return jnp.where(z >= 0, z, LEAKY_SLOPE * z)


def mlp_kernel(x_ref, w1_ref, wp_ref, bp_ref, o_ref):
    """Fused 6-layer MLP on one (tile, F) batch slab.

    x_ref : (tile, F)       f32   batch-tiled activations (cast to bf16 in-kernel)
    w1_ref: (F, 128)        bf16  first-layer weight
    wp_ref: (5, 128, 128)   bf16  zero-padded W2..W5; slot 4 holds W6^T in row 0
    bp_ref: (6, 128)        f32   zero-padded biases b1..b6
    o_ref : (1, tile)       f32   lane-dense output row
    """
    # In-kernel cast: a few VPU ops per vreg, overlapped with MXU work.
    x = x_ref[...].astype(jnp.bfloat16)

    # Layer 1: bf16 x bf16 MXU matmul, f32 accumulation, bias, tanh (EUP).
    h = jnp.dot(x, w1_ref[...], preferred_element_type=jnp.float32)
    h = jnp.tanh(h + bp_ref[0:1, :])                          # (tile, 128) f32

    # Layers 2..5: padded 128x128 bf16 matmuls (single MXU pass each).
    # Zero padding is exact: every activation maps 0 -> 0, so padded columns
    # stay identically zero.
    for k in range(4):
        z = jnp.dot(h.astype(jnp.bfloat16), wp_ref[k],
                    preferred_element_type=jnp.float32)
        h = _leaky_relu(z + bp_ref[k + 1:k + 2, :])           # (tile, 128) f32

    # Layer 6: W6 is stored transposed (slot 4, row 0 holds its 8 weights), so
    # contracting the feature axes of both operands yields the result directly
    # as a lane-dense (., tile) row -- no (tile, 1) column store needed.
    w6t = wp_ref[4][:8, :]                                    # (8, 128) bf16, row 0 nonzero
    y8 = jax.lax.dot_general(
        w6t, h.astype(jnp.bfloat16),
        dimension_numbers=(((1,), (1,)), ((), ())),           # contract feature dims
        preferred_element_type=jnp.float32)                   # (8, tile)
    y = y8[0:1, :] + bp_ref[5:6, 0:1]                         # (1, tile)
    o_ref[...] = y.astype(o_ref.dtype)


def _round_up(n, m):
    return ((n + m - 1) // m) * m


def _num_tensorcores():
    """TensorCores visible to one Pallas grid ('parallel' sharding targets)."""
    try:
        kind = jax.devices()[0].device_kind.lower()
    except Exception:
        return 2  # conservative: forced 2-step split is cheap, missing it isn't
    # Single-TensorCore-per-device generations.
    if any(s in kind for s in ("v2", "v3", "lite", "v5e", "v6")):
        return 1
    # v4 / v5p megacore and v7x expose 2 TensorCores to a 'parallel' grid axis.
    return 2


def _choose_tile(batch, feat, num_tc, *, max_rows=4096, vmem_budget=16 << 20):
    """Batch-tile rows: F-aware, VMEM-aware, generation-aware."""
    # Rough VMEM bytes per batch row in flight:
    #   f32 x tile (double-buffered) + f32 output row (double-buffered)
    #   + live f32/bf16 hidden-activation temporaries (headroom).
    per_row = 2 * feat * 4 + 2 * 4 + 6 * HID * 4
    vmem_rows = max(128, (vmem_budget // per_row) // 128 * 128)
    cap = min(max_rows, vmem_rows)
    if num_tc >= 2 and batch > 128:
        # Keep >= 2 grid steps so both TensorCores get work.
        want = _round_up(pl.cdiv(batch, 2), 128)
    else:
        # Single TC: one grid step whenever the whole batch fits the budget.
        want = _round_up(batch, 128)
    tile = min(want, cap)
    if tile >= batch:
        return batch   # one full-array block (block_shape == array dim is always legal)
    return tile        # multiple of 128, < batch -> masked partial edge block


def _vmem_limit_bytes(tile, feat):
    """Derived VMEM limit: double-buffered I/O tiles + param slabs + activations."""
    x_bytes = 2 * tile * feat * 4                       # f32 x, 2 pipeline buffers
    out_bytes = 2 * tile * 4                            # f32 (1, tile) out, 2 buffers
    param_bytes = 2 * (feat * HID * 2                   # w1 bf16
                       + 5 * HID * HID * 2              # wp bf16
                       + 6 * HID * 4)                   # bp f32
    act_bytes = 6 * tile * HID * 4                      # live hidden activations
    est = x_bytes + out_bytes + param_bytes + act_bytes + (4 << 20)
    return int(min(max(est, 16 << 20), 48 << 20))       # fits v7x's 64 MiB with headroom


def pack_params(params):
    """Pack the 12 (W, b) arrays into 3 slabs (call once, outside the hot path).

    Returns:
      w1p: (F, 128) bf16
      wp : (5, 128, 128) bf16 -- W2..W5 zero-padded at [k, :in, :out]; slot 4
           holds W6 transposed at [4, 0:1, 0:8].
      bp : (6, 128) f32 -- zero-padded biases b1..b6.
    """
    w1, b1, w2, b2, w3, b3, w4, b4, w5, b5, w6, b6 = params
    wp = jnp.zeros((5, HID, HID), jnp.bfloat16)
    for k, w in enumerate((w2, w3, w4, w5)):
        wp = wp.at[k, :w.shape[0], :w.shape[1]].set(w.astype(jnp.bfloat16))
    wp = wp.at[4, :w6.shape[1], :w6.shape[0]].set(w6.T.astype(jnp.bfloat16))
    bp = jnp.zeros((6, HID), jnp.float32)
    for k, b in enumerate((b1, b2, b3, b4, b5, b6)):
        bp = bp.at[k, :b.shape[-1]].set(b.reshape(-1).astype(jnp.float32))
    return w1.astype(jnp.bfloat16), wp, bp


@functools.partial(jax.jit, static_argnames=("block_b",))
def ann_forward(x, packed_params, *, block_b=None):
    """x: (B, F) f32. packed_params: output of pack_params(). Returns (B, 1) f32."""
    w1p, wp, bp = packed_params
    B, F = x.shape

    if block_b is None:
        tile = _choose_tile(B, F, _num_tensorcores())
    else:
        tile = B if block_b >= B else max(128, (block_b // 128) * 128)
    num_tiles = pl.cdiv(B, tile)

    out = pl.pallas_call(
        mlp_kernel,
        out_shape=jax.ShapeDtypeStruct((1, B), jnp.float32),
        grid_spec=pltpu.PrefetchScalarGridSpec(
            num_scalar_prefetch=0,
            grid=(num_tiles,),
            in_specs=[
                # batch-tiled activation stream (last block masked if ragged)
                pl.BlockSpec((tile, F), lambda i: (i, 0)),
                # parameters: whole (small) slabs, same block every grid step
                pl.BlockSpec((F, HID), lambda i: (0, 0)),
                pl.BlockSpec((5, HID, HID), lambda i: (0, 0, 0)),
                pl.BlockSpec((6, HID), lambda i: (0, 0)),
            ],
            # lane-dense output: one (1, tile) row per grid step
            out_specs=pl.BlockSpec((1, tile), lambda i: (0, i)),
        ),
        compiler_params=pltpu.CompilerParams(
            dimension_semantics=("parallel",),          # batch tiles are independent
            vmem_limit_bytes=_vmem_limit_bytes(tile, F),
        ),
    )(x, w1p, wp, bp)

    return out.reshape(B, 1)


def init_params(key, input_features):
    """Deterministic init mimicking PyTorch Linear default U(-1/sqrt(in), 1/sqrt(in)).
    Weights are (in, out), biases (1, out)."""
    dims = [input_features, 128, 64, 32, 16, 8, 1]
    params = []
    for i in range(6):
        fan_in, fan_out = dims[i], dims[i + 1]
        key, kw, kb = jax.random.split(key, 3)
        bound = 1.0 / (fan_in ** 0.5)
        w = jax.random.uniform(kw, (fan_in, fan_out), jnp.float32,
                               minval=-bound, maxval=bound)
        b = jax.random.uniform(kb, (1, fan_out), jnp.float32,
                               minval=-bound, maxval=bound)
        params += [w, b]
    return tuple(params)


def ann_reference(x, params):
    """Pure-JAX f32 reference for verification."""
    w1, b1, w2, b2, w3, b3, w4, b4, w5, b5, w6, b6 = params
    h = jnp.tanh(x @ w1 + b1)
    h = _leaky_relu(h @ w2 + b2)
    h = _leaky_relu(h @ w3 + b3)
    h = _leaky_relu(h @ w4 + b4)
    h = _leaky_relu(h @ w5 + b5)
    return h @ w6 + b6


if __name__ == "__main__":
    key = jax.random.PRNGKey(0)
    key, kx = jax.random.split(key)

    input_features = 32
    batch = 300   # not tile-divisible: exercises the masked edge block

    x = jax.random.normal(kx, (batch, input_features), jnp.float32)
    params = init_params(key, input_features)
    packed = pack_params(params)

    out = jax.block_until_ready(ann_forward(x, packed))

    ref = ann_reference(x, params)
    assert out.shape == (batch, 1)
    max_err = float(jnp.max(jnp.abs(out - ref)))
    # bf16 weights/activations introduce small deviations vs the f32 reference.
    assert max_err < 5e-2, f"mismatch vs reference: max_err={max_err}"

    print("KERNEL_OK")
</pallas_src>

<mosaic_0001>
module attributes {stable_mosaic.version = 11 : i64} {
  func.func @mlp_kernel(%arg0: i32, %arg1: memref<256x32xf32, #tpu.memory_space<vmem>>, %arg2: memref<32x128xbf16, #tpu.memory_space<vmem>>, %arg3: memref<5x128x128xbf16, #tpu.memory_space<vmem>>, %arg4: memref<6x128xf32, #tpu.memory_space<vmem>>, %arg5: memref<1x256xf32, #tpu.memory_space<vmem>>) attributes {dimension_semantics = [#tpu.dimension_semantics<parallel>], iteration_bounds = array<i64: 2>, scalar_prefetch = 0 : i64, scratch_operands = 0 : i64, tpu.core_type = #tpu.core_type<tc>, window_params = [{transform_indices = @transform_0, window_bounds = array<i64: 256, 32>}, {pipeline_mode = #tpu.pipeline_mode<synchronous>, transform_indices = @transform_1, window_bounds = array<i64: 32, 128>}, {pipeline_mode = #tpu.pipeline_mode<synchronous>, transform_indices = @transform_2, window_bounds = array<i64: 5, 128, 128>}, {pipeline_mode = #tpu.pipeline_mode<synchronous>, transform_indices = @transform_3, window_bounds = array<i64: 6, 128>}, {transform_indices = @transform_4, window_bounds = array<i64: 1, 256>}]} {
    %c0 = arith.constant 0 : index
    %c0_0 = arith.constant 0 : index
    %0 = vector.load %arg1[%c0, %c0_0] : memref<256x32xf32, #tpu.memory_space<vmem>>, vector<256x32xf32>
    %1 = arith.truncf %0 : vector<256x32xf32> to vector<256x32xbf16>
    %c0_1 = arith.constant 0 : index
    %c0_2 = arith.constant 0 : index
    %2 = vector.load %arg2[%c0_1, %c0_2] : memref<32x128xbf16, #tpu.memory_space<vmem>>, vector<32x128xbf16>
    %cst = arith.constant dense<0.000000e+00> : vector<256x128xf32>
    %3 = tpu.matmul %1, %2, %cst {dimension_numbers = #tpu.dot_dimension_numbers<[1], [0], [0], [1], [0, 0, 1, 1], [], []>} : vector<256x32xbf16>, vector<32x128xbf16>, vector<256x128xf32> -> vector<256x128xf32>
    %c0_3 = arith.constant 0 : index
    %c0_4 = arith.constant 0 : index
    %4 = vector.load %arg4[%c0_3, %c0_4] : memref<6x128xf32, #tpu.memory_space<vmem>>, vector<1x128xf32>
    %5 = vector.broadcast %4 : vector<1x128xf32> to vector<256x128xf32>
    %6 = arith.addf %3, %5 : vector<256x128xf32>
    %7 = math.tanh %6 : vector<256x128xf32>
    %8 = arith.truncf %7 : vector<256x128xf32> to vector<256x128xbf16>
    %c0_5 = arith.constant 0 : index
    %c0_6 = arith.constant 0 : index
    %c0_7 = arith.constant 0 : index
    %9 = vector.load %arg3[%c0_5, %c0_6, %c0_7] : memref<5x128x128xbf16, #tpu.memory_space<vmem>>, vector<1x128x128xbf16>
    %10 = vector.shape_cast %9 : vector<1x128x128xbf16> to vector<128x128xbf16>
    %cst_8 = arith.constant dense<0.000000e+00> : vector<256x128xf32>
    %11 = tpu.matmul %8, %10, %cst_8 {dimension_numbers = #tpu.dot_dimension_numbers<[1], [0], [0], [1], [0, 0, 1, 1], [], []>} : vector<256x128xbf16>, vector<128x128xbf16>, vector<256x128xf32> -> vector<256x128xf32>
    %c1 = arith.constant 1 : index
    %c0_9 = arith.constant 0 : index
    %12 = vector.load %arg4[%c1, %c0_9] : memref<6x128xf32, #tpu.memory_space<vmem>>, vector<1x128xf32>
    %13 = vector.broadcast %12 : vector<1x128xf32> to vector<256x128xf32>
    %14 = arith.addf %11, %13 : vector<256x128xf32>
    %cst_10 = arith.constant 0.000000e+00 : f32
    %15 = vector.broadcast %cst_10 : f32 to vector<256x128xf32>
    %16 = arith.cmpf oge, %14, %15 : vector<256x128xf32>
    %cst_11 = arith.constant 0.00999999977 : f32
    %17 = vector.broadcast %cst_11 : f32 to vector<256x128xf32>
    %18 = arith.mulf %17, %14 : vector<256x128xf32>
    %19 = arith.select %16, %14, %18 : vector<256x128xi1>, vector<256x128xf32>
    %20 = arith.truncf %19 : vector<256x128xf32> to vector<256x128xbf16>
    %c1_12 = arith.constant 1 : index
    %c0_13 = arith.constant 0 : index
    %c0_14 = arith.constant 0 : index
    %21 = vector.load %arg3[%c1_12, %c0_13, %c0_14] : memref<5x128x128xbf16, #tpu.memory_space<vmem>>, vector<1x128x128xbf16>
    %22 = vector.shape_cast %21 : vector<1x128x128xbf16> to vector<128x128xbf16>
    %cst_15 = arith.constant dense<0.000000e+00> : vector<256x128xf32>
    %23 = tpu.matmul %20, %22, %cst_15 {dimension_numbers = #tpu.dot_dimension_numbers<[1], [0], [0], [1], [0, 0, 1, 1], [], []>} : vector<256x128xbf16>, vector<128x128xbf16>, vector<256x128xf32> -> vector<256x128xf32>
    %c2 = arith.constant 2 : index
    %c0_16 = arith.constant 0 : index
    %24 = vector.load %arg4[%c2, %c0_16] : memref<6x128xf32, #tpu.memory_space<vmem>>, vector<1x128xf32>
    %25 = vector.broadcast %24 : vector<1x128xf32> to vector<256x128xf32>
    %26 = arith.addf %23, %25 : vector<256x128xf32>
    %cst_17 = arith.constant 0.000000e+00 : f32
    %27 = vector.broadcast %cst_17 : f32 to vector<256x128xf32>
    %28 = arith.cmpf oge, %26, %27 : vector<256x128xf32>
    %cst_18 = arith.constant 0.00999999977 : f32
    %29 = vector.broadcast %cst_18 : f32 to vector<256x128xf32>
    %30 = arith.mulf %29, %26 : vector<256x128xf32>
    %31 = arith.select %28, %26, %30 : vector<256x128xi1>, vector<256x128xf32>
    %32 = arith.truncf %31 : vector<256x128xf32> to vector<256x128xbf16>
    %c2_19 = arith.constant 2 : index
    %c0_20 = arith.constant 0 : index
    %c0_21 = arith.constant 0 : index
    %33 = vector.load %arg3[%c2_19, %c0_20, %c0_21] : memref<5x128x128xbf16, #tpu.memory_space<vmem>>, vector<1x128x128xbf16>
    %34 = vector.shape_cast %33 : vector<1x128x128xbf16> to vector<128x128xbf16>
    %cst_22 = arith.constant dense<0.000000e+00> : vector<256x128xf32>
    %35 = tpu.matmul %32, %34, %cst_22 {dimension_numbers = #tpu.dot_dimension_numbers<[1], [0], [0], [1], [0, 0, 1, 1], [], []>} : vector<256x128xbf16>, vector<128x128xbf16>, vector<256x128xf32> -> vector<256x128xf32>
    %c3 = arith.constant 3 : index
    %c0_23 = arith.constant 0 : index
    %36 = vector.load %arg4[%c3, %c0_23] : memref<6x128xf32, #tpu.memory_space<vmem>>, vector<1x128xf32>
    %37 = vector.broadcast %36 : vector<1x128xf32> to vector<256x128xf32>
    %38 = arith.addf %35, %37 : vector<256x128xf32>
    %cst_24 = arith.constant 0.000000e+00 : f32
    %39 = vector.broadcast %cst_24 : f32 to vector<256x128xf32>
    %40 = arith.cmpf oge, %38, %39 : vector<256x128xf32>
    %cst_25 = arith.constant 0.00999999977 : f32
    %41 = vector.broadcast %cst_25 : f32 to vector<256x128xf32>
    %42 = arith.mulf %41, %38 : vector<256x128xf32>
    %43 = arith.select %40, %38, %42 : vector<256x128xi1>, vector<256x128xf32>
    %44 = arith.truncf %43 : vector<256x128xf32> to vector<256x128xbf16>
    %c3_26 = arith.constant 3 : index
    %c0_27 = arith.constant 0 : index
    %c0_28 = arith.constant 0 : index
    %45 = vector.load %arg3[%c3_26, %c0_27, %c0_28] : memref<5x128x128xbf16, #tpu.memory_space<vmem>>, vector<1x128x128xbf16>
    %46 = vector.shape_cast %45 : vector<1x128x128xbf16> to vector<128x128xbf16>
    %cst_29 = arith.constant dense<0.000000e+00> : vector<256x128xf32>
    %47 = tpu.matmul %44, %46, %cst_29 {dimension_numbers = #tpu.dot_dimension_numbers<[1], [0], [0], [1], [0, 0, 1, 1], [], []>} : vector<256x128xbf16>, vector<128x128xbf16>, vector<256x128xf32> -> vector<256x128xf32>
    %c4 = arith.constant 4 : index
    %c0_30 = arith.constant 0 : index
    %48 = vector.load %arg4[%c4, %c0_30] : memref<6x128xf32, #tpu.memory_space<vmem>>, vector<1x128xf32>
    %49 = vector.broadcast %48 : vector<1x128xf32> to vector<256x128xf32>
    %50 = arith.addf %47, %49 : vector<256x128xf32>
    %cst_31 = arith.constant 0.000000e+00 : f32
    %51 = vector.broadcast %cst_31 : f32 to vector<256x128xf32>
    %52 = arith.cmpf oge, %50, %51 : vector<256x128xf32>
    %cst_32 = arith.constant 0.00999999977 : f32
    %53 = vector.broadcast %cst_32 : f32 to vector<256x128xf32>
    %54 = arith.mulf %53, %50 : vector<256x128xf32>
    %55 = arith.select %52, %50, %54 : vector<256x128xi1>, vector<256x128xf32>
    %c4_33 = arith.constant 4 : index
    %c0_34 = arith.constant 0 : index
    %c0_35 = arith.constant 0 : index
    %56 = vector.load %arg3[%c4_33, %c0_34, %c0_35] : memref<5x128x128xbf16, #tpu.memory_space<vmem>>, vector<1x128x128xbf16>
    %57 = vector.shape_cast %56 : vector<1x128x128xbf16> to vector<128x128xbf16>
    %58 = vector.extract_strided_slice %57 {offsets = [0, 0], sizes = [8, 128], strides = [1, 1]} : vector<128x128xbf16> to vector<8x128xbf16>
    %59 = arith.truncf %55 : vector<256x128xf32> to vector<256x128xbf16>
    %cst_36 = arith.constant dense<0.000000e+00> : vector<8x256xf32>
    %60 = tpu.matmul %58, %59, %cst_36 {dimension_numbers = #tpu.dot_dimension_numbers<[1], [1], [0], [0], [0, 0, 1, 0], [], []>} : vector<8x128xbf16>, vector<256x128xbf16>, vector<8x256xf32> -> vector<8x256xf32>
    %61 = vector.extract_strided_slice %60 {offsets = [0, 0], sizes = [1, 256], strides = [1, 1]} : vector<8x256xf32> to vector<1x256xf32>
    %c5 = arith.constant 5 : index
    %c0_37 = arith.constant 0 : index
    %62 = vector.load %arg4[%c5, %c0_37] : memref<6x128xf32, #tpu.memory_space<vmem>>, vector<1x1xf32>
    %63 = vector.broadcast %62 : vector<1x1xf32> to vector<1x256xf32>
    %64 = arith.addf %61, %63 : vector<1x256xf32>
    %c0_38 = arith.constant 0 : index
    %c0_39 = arith.constant 0 : index
    %65 = vector.load %arg5[%c0_38, %c0_39] : memref<1x256xf32, #tpu.memory_space<vmem>>, vector<1x256xf32>
    tpu.vector_store %arg5[%c0_38, %c0_39], %64 {strides = array<i32>} : memref<1x256xf32, #tpu.memory_space<vmem>>, vector<1x256xf32>,
    return
  }
  func.func @transform_0(%arg0: i32) -> (i32, i32) {
    %c0_i32 = arith.constant 0 : i32
    %c0_i32_0 = arith.constant 0 : i32
    return %arg0, %c0_i32 : i32, i32
  }
  func.func @transform_1(%arg0: i32) -> (i32, i32) {
    %c0_i32 = arith.constant 0 : i32
    %c0_i32_0 = arith.constant 0 : i32
    %c0_i32_1 = arith.constant 0 : i32
    return %c0_i32, %c0_i32_0 : i32, i32
  }
  func.func @transform_2(%arg0: i32) -> (i32, i32, i32) {
    %c0_i32 = arith.constant 0 : i32
    %c0_i32_0 = arith.constant 0 : i32
    %c0_i32_1 = arith.constant 0 : i32
    %c0_i32_2 = arith.constant 0 : i32
    return %c0_i32, %c0_i32_0, %c0_i32_1 : i32, i32, i32
  }
  func.func @transform_3(%arg0: i32) -> (i32, i32) {
    %c0_i32 = arith.constant 0 : i32
    %c0_i32_0 = arith.constant 0 : i32
    %c0_i32_1 = arith.constant 0 : i32
    return %c0_i32, %c0_i32_0 : i32, i32
  }
  func.func @transform_4(%arg0: i32) -> (i32, i32) {
    %c0_i32 = arith.constant 0 : i32
    %c0_i32_0 = arith.constant 0 : i32
    return %c0_i32, %arg0 : i32, i32
  }
}

</mosaic_0001>

<bundles_post_ra>
// kernel: ann_forward.1
= control target key start
LH: loop header
LB: loop body
LE: loop exit
PB: predicated region body
PF: predicated region fallthrough
CT: control target
= control target key end

     0   :  { %9 = vsyncpa [#allocation3], 0  ;;  %s3335_s0 = inlined_call_operand.vmem [shape: f32[300,32], index: 0, kind: input, shape index: {}]   ;;  %s3336_s1 = inlined_call_operand.vmem [shape: bf16[32,128], index: 1, kind: input, shape index: {}]   ;;  %s3337_s2 = inlined_call_operand.vmem [shape: bf16[5,128,128], index: 2, kind: input, shape index: {}]   ;;  %s3338_s3 = inlined_call_operand.vmem [shape: f32[6,128], index: 3, kind: input, shape index: {}]   ;;  %s3339_s4 = inlined_call_operand.hbm [shape: f32[1,300], index: 4, kind: output, shape index: {}]  }
   0x1   :  { %11 = vsyncpa [#allocation3 + $0x1], 0  ;;  %s2787_s15 = smov 0   ;;  %s2789_s16 = smov 0  }
   0x2   :  { %s2791_s17 = smov 0   ;;  %s2793_s18 = smov 0  }
   0x3 LB: > { %s2808_s19 = sadd.s32 4294967295, %s2757_s18   ;;  %s2075_s20 = sadd.s32 4294967294, %s2757_s18   ;;  %s2757_s18 = sphi %s2793_s18, %s3345_s18   ;;  %s2753_s17 = sphi %s2791_s17, %s3344_s17   ;;  %s2749_s16 = sphi %s2789_s16, %s3343_s16   ;;  %s2745_s15 = sphi %s2787_s15, %s3342_s15  }
   0x4   : > { %s2812_s21 = sadd.s32 1, %s2757_s18   ;;  %s113_s22 = sadd.s32 1, %s2753_s17 }
   0x5   : > { %s110_s23 = ssub.s32 %s2757_s18, %s2812_s21  ;;  %p123_p0 = scmp.ne.s32.totalorder %s2753_s17, %s2749_s16 }
   0x6   : > { %p111_p1 = scmp.eq.s32.totalorder %s110_s23, 0  ;;  %p124_p2 = scmp.eq.s32.totalorder %s2808_s19, 1 }
   0x7   : > { %p129_p3 = scmp.ne.s32.totalorder %s2749_s16, %s2745_s15  ;;  %p130_p4 = scmp.eq.s32.totalorder %s2075_s20, 1 }
   0x8   : > { %s2823_s24 = scalar_select %p111_p1, %s2753_s17, %s113_s22  }
   0x9   : > { %p2825_p5 = por %p124_p2, %p123_p0  ;;  %p2829_p6 = por %p130_p4, %p129_p3 }
   0xa   : > { %p2078_p7 = scmp.ge.s32.totalorder %s2757_s18, 1  ;;  %p174_p8 = scmp.lt.s32.totalorder %s2757_s18, 3 }
   0xc   : > { %p175_p9 = pnand %p2078_p7, %p174_p8 }
   0xd   : > { %s2839_s29 = sshll.u32 (!%p175_p9), %s2808_s19, 5 }
   0xe   : > { %178 = sbr.rel (%p175_p9) target bundleno = 1421 (0x58d), region = 36  ;;  %p209_p10 = scmp.lt.s32.totalorder (!%p175_p9), %s2839_s29, 37 }
  0x13   : > { %v2599_v0 = vld [vmem:[%s3336_s1 + $0x8] sm:$0xff]   ;;  %v2600_v1 = vld [vmem:[%s3336_s1] sm:$0xff]   ;;  %s210_s6 = scalar_select %p209_p10, %s2839_s29, 37  ;;  %v2601_v2 = vld [vmem:[%s3337_s2 + $0x38] sm:$0xff]   ;;  %vm293_vm0 = vcmask 261120  }
  0x14   : > { %2326 = vmatprep.subr.bf16.mxu0 %v2599_v0  ;;  %2554 = vmatprep.subr.bf16.mxu1 %v2599_v0  ;;  %v2602_v24 = vld [vmem:[%s3337_s2 + $0x30] sm:$0xff]   ;;  %v2603_v52 = vld [vmem:[%s3337_s2 + $0x28] sm:$0xff]   ;;  %v2604_v53 = vld [vmem:[%s3337_s2 + $0x20] sm:$0xff]   ;;  %s2187_s13 = sshll.u32 (%p2825_p5), %s2808_s19, 1 }
  0x15   : > { %2327 = vmatpush3.bf16.msra.mxu0 %v2599_v0  ;;  %2556 = vmatpush3.bf16.msra.mxu1 %v2599_v0  ;;  %s2081_s9 = sshll.u32 %s210_s6, 3  ;;  %v2605_v54 = vld [vmem:[%s3337_s2 + $0x18] sm:$0xff]   ;;  %v2606_v55 = vld [vmem:[%s3337_s2 + $0x10] sm:$0xff]   ;;  %v2607_v56 = vld [vmem:[%s3337_s2 + $0x8] sm:$0xff]   ;;  %s2005_s14 = ssub.s32 (%p2825_p5), 3, %s2187_s13 }
  0x16   : > { %2328 = vmatprep.subr.bf16.mxu0 %v2600_v1  ;;  %2555 = vmatprep.subr.bf16.mxu1 %v2600_v1  ;;  %s2852_s12 = scalar_lea.vmem %s3335_s0, %s2081_s9  ;;  %v2608_v57 = vld [vmem:[%s3337_s2] sm:$0xff]   ;;  %v2609_v58 = vld [vmem:[%s3337_s2 + $0x78] sm:$0xff]   ;;  %v2610_v59 = vld [vmem:[%s3337_s2 + $0x70] sm:$0xff]   ;;  %s201_s9 = sand.u32 1, %s2749_s16  }
  0x17   : > { %v224_v3 = vld [vmem:[%s2852_s12] sm:$0xff]  ;;  %v225_v4 = vld [vmem:[%s2852_s12 + $0x8] sm:$0xff]  ;;  %v226_v5 = vld [vmem:[%s2852_s12 + $0x10] sm:$0xff]  ;;  %s2079_s10 = sshll.u32 %s201_s9, 1  ;;  %p2006_p11 = scmp.lt.s32.totalorder (%p2825_p5), %s2005_s14, 2 }
  0x18   : > { %v256_v6 = vpack.c.bf16 %v225_v4, %v224_v3  ;;  %v227_v7 = vld [vmem:[%s2852_s12 + $0x18] sm:$0xff]  ;;  %v228_v8 = vld [vmem:[%s2852_s12 + $0x20] sm:$0xff]  ;;  %v229_v9 = vld [vmem:[%s2852_s12 + $0x28] sm:$0xff]  ;;  %s203_s11 = scalar_lea.vmem [#allocation2], %s2079_s10 }
  0x19   : > { %2329 = vmatpush3.bf16.msra.mxu0 %v2600_v1  ;;  %2557 = vmatpush3.bf16.msra.mxu1 %v2600_v1  ;;  %v257_v10 = vpack.c.bf16 %v227_v7, %v226_v5  ;;  %v258_v11 = vpack.c.bf16 %v229_v9, %v228_v8  ;;  %v230_v12 = vld [vmem:[%s2852_s12 + $0x30] sm:$0xff]  ;;  %v231_v13 = vld [vmem:[%s2852_s12 + $0x38] sm:$0xff]  ;;  %v232_v14 = vld [vmem:[%s2852_s12 + $0x40] sm:$0xff] }
  0x1a   : > { %2362 = vmatprep.subr.bf16.mxu1 %v2601_v2  ;;  %2330 = vmatprep.mubr.msk.bf16.mxu0 %vm293_vm0, %v256_v6  ;;  %v233_v15 = vld [vmem:[%s2852_s12 + $0x48] sm:$0xff]  ;;  %v240_v16 = vld [vmem:[%s2852_s12 + $0x80] sm:$0xff]  ;;  %v242_v19 = vld [vmem:[%s2852_s12 + $0x90] sm:$0xff]  ;;  %v259_v25 = vpack.c.bf16 %v231_v13, %v230_v12 }
  0x1b   : > { %v241_v17 = vld [vmem:[%s2852_s12 + $0x88] sm:$0xff]  ;;  %v243_v20 = vld [vmem:[%s2852_s12 + $0x98] sm:$0xff]  ;;  %v244_v21 = vld [vmem:[%s2852_s12 + $0xa0] sm:$0xff]  ;;  %v260_v27 = vpack.c.bf16 %v233_v15, %v232_v14  ;;  %2410 = vmatprep.subr.bf16.mxu0 %v2609_v58 }
  0x1c   : > { %2331 = vmatmul.mubr.msk.bf16.vlgmr.msra.gmra.mxu0 %vm293_vm0, %v257_v10  ;;  %v264_v18 = vpack.c.bf16 %v241_v17, %v240_v16  ;;  %v265_v22 = vpack.c.bf16 %v243_v20, %v242_v19  ;;  %v245_v23 = vld [vmem:[%s2852_s12 + $0xa8] sm:$0xff]  ;;  %v246_v28 = vld [vmem:[%s2852_s12 + $0xb0] sm:$0xff]  ;;  %v247_v29 = vld [vmem:[%s2852_s12 + $0xb8] sm:$0xff] }
  0x1d   : > { %2334 = vmatprep.mubr.msk.bf16.mxu0 %vm293_vm0, %v258_v11  ;;  %v266_v26 = vpack.c.bf16 %v245_v23, %v244_v21  ;;  %v248_v30 = vld [vmem:[%s2852_s12 + $0xc0] sm:$0xff]  ;;  %v249_v31 = vld [vmem:[%s2852_s12 + $0xc8] sm:$0xff]  ;;  %v234_v32 = vld [vmem:[%s2852_s12 + $0x50] sm:$0xff]  ;;  %v267_v36 = vpack.c.bf16 %v247_v29, %v246_v28  ;;  %2411 = vmatpush3.bf16.msra.mxu0 %v2609_v58 }
  0x1e   : > { %2346 = vmatprep.mubr.msk.bf16.mxu1 %vm293_vm0, %v264_v18  ;;  %v235_v33 = vld [vmem:[%s2852_s12 + $0x58] sm:$0xff]  ;;  %v236_v34 = vld [vmem:[%s2852_s12 + $0x60] sm:$0xff]  ;;  %v237_v35 = vld [vmem:[%s2852_s12 + $0x68] sm:$0xff]  ;;  %v268_v37 = vpack.c.bf16 %v249_v31, %v248_v30  ;;  %2412 = vmatprep.subr.bf16.mxu0 %v2610_v59 }
  0x1f   : > { %2347 = vmatmul.mubr.msk.bf16.vlgmr.msra.gmra.mxu1 %vm293_vm0, %v265_v22  ;;  %v261_v38 = vpack.c.bf16 %v235_v33, %v234_v32  ;;  %v250_v39 = vld [vmem:[%s2852_s12 + $0xd0] sm:$0xff]  ;;  %v251_v40 = vld [vmem:[%s2852_s12 + $0xd8] sm:$0xff]  ;;  %v262_v41 = vpack.c.bf16 %v237_v35, %v236_v34  ;;  %v252_v42 = vld [vmem:[%s2852_s12 + $0xe0] sm:$0xff] }
  0x20   : > { %2350 = vmatprep.mubr.msk.bf16.mxu1 %vm293_vm0, %v266_v26  ;;  %2363 = vmatpush3.bf16.msra.mxu1 %v2601_v2  ;;  %v253_v43 = vld [vmem:[%s2852_s12 + $0xe8] sm:$0xff]  ;;  %v238_v44 = vld [vmem:[%s2852_s12 + $0x70] sm:$0xff]  ;;  %v239_v45 = vld [vmem:[%s2852_s12 + $0x78] sm:$0xff]  ;;  %v269_v46 = vpack.c.bf16 %v251_v40, %v250_v39 }
  0x21   : > { %2364 = vmatprep.subr.bf16.mxu1 %v2602_v24  ;;  %v270_v47 = vpack.c.bf16 %v253_v43, %v252_v42  ;;  %v263_v48 = vpack.c.bf16 %v239_v45, %v238_v44  ;;  %v254_v49 = vld [vmem:[%s2852_s12 + $0xf0] sm:$0xff]  ;;  %v255_v50 = vld [vmem:[%s2852_s12 + $0xf8] sm:$0xff]  ;;  %v2611_v60 = vld [vmem:[%s3337_s2 + $0x68] sm:$0xff]   ;;  %2413 = vmatpush3.bf16.msra.mxu0 %v2610_v59  ;;  %s3288_s12 = scalar_lea.sflag [#allocation3], %s201_s9 }
  0x22   : > { %v271_v51 = vpack.c.bf16 %v255_v50, %v254_v49  ;;  %2414 = vmatprep.subr.bf16.mxu0 %v2611_v60  ;;  %v2612_v61 = vld [vmem:[%s3337_s2 + $0x60] sm:$0xff]   ;;  %v2613_v62 = vld [vmem:[%s3337_s2 + $0x58] sm:$0xff]  }
  0x23   : > { %v2941_v0 = vld [vmem:[%s3338_s3] ss:$0 sm:$0xff] }
  0x24   : > { %2335 = vmatmul.mubr.msk.bf16.gmra.mxu0 %vm293_vm0, %v259_v25  ;;  %2365 = vmatpush3.bf16.msra.mxu1 %v2602_v24 }
  0x25   : > { %2338 = vmatprep.mubr.msk.bf16.mxu0 %vm293_vm0, %v260_v27  ;;  %2366 = vmatprep.subr.bf16.mxu1 %v2603_v52 }
  0x26   : > { %2415 = vmatpush3.bf16.msra.mxu0 %v2611_v60 }
  0x27   : > { %2351 = vmatmul.mubr.msk.bf16.gmra.mxu1 %vm293_vm0, %v267_v36  ;;  %2416 = vmatprep.subr.bf16.mxu0 %v2612_v61 }
  0x28   : > { %2354 = vmatprep.mubr.msk.bf16.mxu1 %vm293_vm0, %v268_v37  ;;  %2367 = vmatpush3.bf16.msra.mxu1 %v2603_v52 }
  0x29   : > { %2368 = vmatprep.subr.bf16.mxu1 %v2604_v53 }
  0x2a   : > { %2417 = vmatpush3.bf16.msra.mxu0 %v2612_v61 }
  0x2b   : > { %2418 = vmatprep.subr.bf16.mxu0 %v2613_v62 }
  0x2c   : > { %2339 = vmatmul.mubr.msk.bf16.gmra.mxu0 %vm293_vm0, %v261_v38  ;;  %2369 = vmatpush3.bf16.msra.mxu1 %v2604_v53 }
  0x2d   : > { %2342 = vmatprep.mubr.msk.bf16.mxu0 %vm293_vm0, %v262_v41  ;;  %2370 = vmatprep.subr.bf16.mxu1 %v2605_v54 }
  0x2e   : > { %2419 = vmatpush3.bf16.msra.mxu0 %v2613_v62 }
  0x2f   : > { %2355 = vmatmul.mubr.msk.bf16.gmra.mxu1 %vm293_vm0, %v269_v46 }
  0x30   : > { %2358 = vmatprep.mubr.msk.bf16.mxu1 %vm293_vm0, %v270_v47  ;;  %2371 = vmatpush3.bf16.msra.mxu1 %v2605_v54 }
  0x31   : > { %2372 = vmatprep.subr.bf16.mxu1 %v2606_v55 }
  0x34   : > { %2343 = vmatmul.mubr.msk.bf16.gmra.mxu0 %vm293_vm0, %v263_v48  ;;  %2373 = vmatpush3.bf16.msra.mxu1 %v2606_v55 }
  0x35   : > { %2374 = vmatprep.subr.bf16.mxu1 %v2607_v56 }
  0x37   : > { %2359 = vmatmul.mubr.msk.bf16.gmra.mxu1 %vm293_vm0, %v271_v51 }
  0x38   : > { %2375 = vmatpush3.bf16.msra.mxu1 %v2607_v56 }
  0x39   : > { %2376 = vmatprep.subr.bf16.mxu1 %v2608_v57 }
  0x3c   : > { %2377 = vmatpush3.bf16.msra.mxu1 %v2608_v57 }
  0xdc   : > { %v2332_v63 = vpop.f32.mrf.mxu0 }
  0xdd   : > { %v385_v6 = vadd.f32 %v2332_v63, %v2941_v0 }
  0xde   : > { %v376_v1 = vpop.f32.mrf.mxu0 }
  0xdf   : > { %v377_v2 = vadd.f32 %v2941_v0, %v376_v1  ;;  %v2945_v5 = vpop.f32.mrf.mxu1 }
  0xe0   : > { %v2333_v3 = vpop.f32.mrf.mxu0  ;;  %v449_v58 = vadd.f32 %v2945_v5, %v2941_v0 }
  0xe1   : > { %v388_v4 = vadd.f32 %v2333_v3, %v2941_v0  ;;  %2633 = vtanh.f32 %v377_v2  ;;  %v440_v9 = vpop.f32.mrf.mxu1 }
  0xe2   : > { %v379_v7 = vpop.f32.mrf.mxu0  ;;  %v441_v41 = vadd.f32 %v2941_v0, %v440_v9 }
  0xe3   : > { %v380_v8 = vadd.f32 %v2941_v0, %v379_v7  ;;  %2635 = vtanh.f32 %v388_v4  ;;  %v2949_v11 = vpop.f32.mrf.mxu1 }
  0xe4   : > { %v2336_v10 = vpop.f32.mrf.mxu0  ;;  %v452_v62 = vadd.f32 %v2949_v11, %v2941_v0 }
  0xe5   : > { %2637 = vtanh.f32 %v380_v8  ;;  %v443_v14 = vpop.f32.mrf.mxu1  ;;  %v401_v18 = vadd.f32 %v2336_v10, %v2941_v0 }
  0xe6   : > { %2639 = vtanh.f32 %v385_v6  ;;  %v392_v12 = vpop.f32.mrf.mxu0  ;;  %v444_v43 = vadd.f32 %v2941_v0, %v443_v14 }
  0xe7   : > { %v393_v13 = vadd.f32 %v2941_v0, %v392_v12  ;;  %v2953_v17 = vpop.f32.mrf.mxu1 }
  0xe8   : > { %v2337_v15 = vpop.f32.mrf.mxu0  ;;  %v465_v7 = vadd.f32 %v2953_v17, %v2941_v0 }
  0xe9   : > { %v404_v16 = vadd.f32 %v2337_v15, %v2941_v0  ;;  %2641 = vtanh.f32 %v393_v13  ;;  %v456_v21 = vpop.f32.mrf.mxu1 }
  0xea   : > { %v395_v19 = vpop.f32.mrf.mxu0  ;;  %v457_v59 = vadd.f32 %v2941_v0, %v456_v21 }
  0xeb   : > { %v396_v20 = vadd.f32 %v2941_v0, %v395_v19  ;;  %2643 = vtanh.f32 %v404_v16  ;;  %v2957_v23 = vpop.f32.mrf.mxu1 }
  0xec   : > { %v2340_v22 = vpop.f32.mrf.mxu0  ;;  %v468_v13 = vadd.f32 %v2957_v23, %v2941_v0 }
  0xed   : > { %2645 = vtanh.f32 %v396_v20  ;;  %v459_v26 = vpop.f32.mrf.mxu1  ;;  %v417_v33 = vadd.f32 %v2340_v22, %v2941_v0 }
  0xee   : > { %2647 = vtanh.f32 %v401_v18  ;;  %v408_v24 = vpop.f32.mrf.mxu0  ;;  %v2634_v27 = vpop.eup %2633  ;;  %v460_v60 = vadd.f32 %v2941_v0, %v459_v26 }
  0xef   : > { %v409_v25 = vadd.f32 %v2941_v0, %v408_v24  ;;  %v2961_v31 = vpop.f32.mrf.mxu1 }
  0xf0   : > { %v2341_v28 = vpop.f32.mrf.mxu0  ;;  %v2636_v29 = vpop.eup %2635  ;;  %v481_v22 = vadd.f32 %v2961_v31, %v2941_v0 }
  0xf1   : > { %v420_v30 = vadd.f32 %v2341_v28, %v2941_v0  ;;  %2649 = vtanh.f32 %v409_v25  ;;  %v472_v40 = vpop.f32.mrf.mxu1 }
  0xf2   : > { %v2638_v32 = vpop.eup %2637  ;;  %v411_v34 = vpop.f32.mrf.mxu0  ;;  %v473_v9 = vadd.f32 %v2941_v0, %v472_v40 }
  0xf3   : > { %v2640_v35 = vpop.eup %2639  ;;  %v412_v36 = vadd.f32 %v2941_v0, %v411_v34  ;;  %v535_v37 = vpack.c.bf16 %v2638_v32, %v2634_v27  ;;  %2651 = vtanh.f32 %v420_v30  ;;  %v2968_v47 = vpop.f32.mrf.mxu1 }
  0xf4   : > { %v2344_v38 = vpop.f32.mrf.mxu0  ;;  %v536_v39 = vpack.c.bf16 %v2636_v29, %v2640_v35  ;;  %v484_v28 = vadd.f32 %v2968_v47, %v2941_v0 }
  0xf5   : > { %2653 = vtanh.f32 %v412_v36  ;;  %2378 = vmatprep.mubr.bf16.mxu1 %v535_v37  ;;  %v433_v51 = vadd.f32 %v2344_v38, %v2941_v0  ;;  %v475_v57 = vpop.f32.mrf.mxu1 }
  0xf6   : > { %2655 = vtanh.f32 %v417_v33  ;;  %v424_v42 = vpop.f32.mrf.mxu0  ;;  %2379 = vmatmul.mubr.bf16.vlgmr.msra.gmra.mxu1 %v536_v39  ;;  %v2642_v45 = vpop.eup %2641  ;;  %v476_v11 = vadd.f32 %v2941_v0, %v475_v57  ;;  %v2623_v57 = vld [vmem:[%s3337_s2 + $0x88] sm:$0xff]  }
  0xf7   : > { %v425_v44 = vadd.f32 %v2941_v0, %v424_v42  ;;  %2657 = vtanh.f32 %v441_v41  ;;  %v2360_v63 = vpop.f32.mrf.mxu1 }
  0xf8   : > { %v2345_v46 = vpop.f32.mrf.mxu0  ;;  %v2644_v48 = vpop.eup %2643  ;;  %2659 = vtanh.f32 %v444_v43  ;;  %v497_v34 = vadd.f32 %v2360_v63, %v2941_v0 }
  0xf9   : > { %v436_v49 = vadd.f32 %v2345_v46, %v2941_v0  ;;  %2661 = vtanh.f32 %v425_v44  ;;  %v488_v6 = vpop.f32.mrf.mxu1 }
  0xfa   : > { %v2646_v50 = vpop.eup %2645  ;;  %v427_v52 = vpop.f32.mrf.mxu0  ;;  %v489_v23 = vadd.f32 %v2941_v0, %v488_v6 }
  0xfb   : > { %v2648_v53 = vpop.eup %2647  ;;  %v428_v54 = vadd.f32 %v2941_v0, %v427_v52  ;;  %v537_v55 = vpack.c.bf16 %v2646_v50, %v2642_v45  ;;  %2663 = vtanh.f32 %v436_v49  ;;  %v2361_v14 = vpop.f32.mrf.mxu1  ;;  %v2615_v49 = vld [vmem:[%s3337_s2 + $0x48] sm:$0xff]   ;;  %v2616_v50 = vld [vmem:[%s3337_s2 + $0x40] sm:$0xff]   ;;  %v2618_v52 = vld [vmem:[%s3337_s2 + $0xb0] sm:$0xff]  }
  0xfc   : > { %v538_v56 = vpack.c.bf16 %v2644_v48, %v2648_v53  ;;  %v500_v36 = vadd.f32 %v2361_v14, %v2941_v0  ;;  %v2619_v53 = vld [vmem:[%s3337_s2 + $0xa8] sm:$0xff]  }
  0xfd   : > { %2665 = vtanh.f32 %v428_v54  ;;  %2382 = vmatprep.mubr.bf16.mxu1 %v537_v55  ;;  %v491_v21 = vpop.f32.mrf.mxu1  ;;  %v2620_v54 = vld [vmem:[%s3337_s2 + $0xa0] sm:$0xff]   ;;  %v2621_v55 = vld [vmem:[%s3337_s2 + $0x98] sm:$0xff]  }
  0xfe   : > { %2667 = vtanh.f32 %v433_v51  ;;  %2383 = vmatmul.mubr.bf16.gmra.mxu1 %v538_v56  ;;  %v2650_v61 = vpop.eup %2649  ;;  %v492_v26 = vadd.f32 %v2941_v0, %v491_v21  ;;  %v2614_v0 = vld [vmem:[%s3337_s2 + $0x50] sm:$0xff]   ;;  %v2617_v51 = vld [vmem:[%s3337_s2 + $0xb8] sm:$0xff]  }
  0xff   : > { %2669 = vtanh.f32 %v449_v58  ;;  %2420 = vmatprep.subr.bf16.mxu0 %v2614_v0  ;;  %2458 = vmatprep.subr.bf16.mxu1 %v2617_v51  ;;  %v2622_v56 = vld [vmem:[%s3337_s2 + $0x90] sm:$0xff]  }
 0x100   : > { %v2652_v1 = vpop.eup %2651  ;;  %2671 = vtanh.f32 %v457_v59  ;;  %2421 = vmatpush3.bf16.msra.mxu0 %v2614_v0  ;;  %2459 = vmatpush3.bf16.msra.mxu1 %v2617_v51  ;;  %v3026_v59 = vld [vmem:[%s3338_s3 + $0x1] ss:$0 sm:$0xff] }
 0x101   : > { %2673 = vtanh.f32 %v460_v60  ;;  %2422 = vmatprep.subr.bf16.mxu0 %v2615_v49  ;;  %2460 = vmatprep.subr.bf16.mxu1 %v2618_v52 }
 0x102   : > { %v2654_v2 = vpop.eup %2653  ;;  %2675 = vtanh.f32 %v452_v62 }
 0x103   : > { %v2656_v3 = vpop.eup %2655  ;;  %v539_v4 = vpack.c.bf16 %v2654_v2, %v2650_v61  ;;  %2677 = vtanh.f32 %v465_v7 }
 0x104   : > { %v540_v5 = vpack.c.bf16 %v2652_v1, %v2656_v3  ;;  %v2658_v8 = vpop.eup %2657  ;;  %2679 = vtanh.f32 %v473_v9  ;;  %2423 = vmatpush3.bf16.msra.mxu0 %v2615_v49  ;;  %2461 = vmatpush3.bf16.msra.mxu1 %v2618_v52 }
 0x105   : > { %2386 = vmatprep.mubr.bf16.mxu1 %v539_v4  ;;  %v2660_v10 = vpop.eup %2659  ;;  %2681 = vtanh.f32 %v476_v11  ;;  %2424 = vmatprep.subr.bf16.mxu0 %v2616_v50 }
 0x106   : > { %2387 = vmatmul.mubr.bf16.gmra.mxu1 %v540_v5  ;;  %v2662_v12 = vpop.eup %2661  ;;  %v543_v19 = vpack.c.bf16 %v2660_v10, %v2658_v8  ;;  %2683 = vtanh.f32 %v468_v13  ;;  %2462 = vmatprep.subr.bf16.mxu1 %v2619_v53 }
 0x107   : > { %2685 = vtanh.f32 %v481_v22 }
 0x108   : > { %v2664_v15 = vpop.eup %2663  ;;  %2687 = vtanh.f32 %v489_v23  ;;  %2425 = vmatpush3.bf16.msra.mxu0 %v2616_v50  ;;  %2463 = vmatpush3.bf16.msra.mxu1 %v2619_v53 }
 0x109   : > { %2689 = vtanh.f32 %v492_v26  ;;  %2464 = vmatprep.subr.bf16.mxu1 %v2620_v54 }
 0x10a   : > { %v2666_v16 = vpop.eup %2665  ;;  %2691 = vtanh.f32 %v484_v28 }
 0x10b   : > { %v2668_v18 = vpop.eup %2667  ;;  %v541_v17 = vpack.c.bf16 %v2666_v16, %v2662_v12  ;;  %2693 = vtanh.f32 %v497_v34 }
 0x10c   : > { %v542_v20 = vpack.c.bf16 %v2664_v15, %v2668_v18  ;;  %v2670_v24 = vpop.eup %2669  ;;  %2695 = vtanh.f32 %v500_v36  ;;  %2465 = vmatpush3.bf16.msra.mxu1 %v2620_v54 }
 0x10d   : > { %2390 = vmatprep.mubr.bf16.mxu1 %v541_v17  ;;  %v2672_v25 = vpop.eup %2671  ;;  %2466 = vmatprep.subr.bf16.mxu1 %v2621_v55 }
 0x10e   : > { %2391 = vmatmul.mubr.bf16.gmra.mxu1 %v542_v20  ;;  %v2674_v27 = vpop.eup %2673 }
 0x10f   : > { %2394 = vmatprep.mubr.bf16.mxu1 %v543_v19  ;;  %v2676_v29 = vpop.eup %2675  ;;  %v545_v30 = vpack.c.bf16 %v2674_v27, %v2672_v25 }
 0x110   : > { %v544_v31 = vpack.c.bf16 %v2676_v29, %v2670_v24  ;;  %v2678_v32 = vpop.eup %2677  ;;  %2467 = vmatpush3.bf16.msra.mxu1 %v2621_v55 }
 0x111   : > { %v2680_v33 = vpop.eup %2679  ;;  %2468 = vmatprep.subr.bf16.mxu1 %v2622_v56 }
 0x112   : > { %v2682_v35 = vpop.eup %2681 }
 0x113   : > { %v2684_v37 = vpop.eup %2683  ;;  %v547_v38 = vpack.c.bf16 %v2682_v35, %v2680_v33 }
 0x114   : > { %v546_v39 = vpack.c.bf16 %v2684_v37, %v2678_v32  ;;  %v2686_v40 = vpop.eup %2685  ;;  %2469 = vmatpush3.bf16.msra.mxu1 %v2622_v56 }
 0x115   : > { %v2688_v41 = vpop.eup %2687  ;;  %2470 = vmatprep.subr.bf16.mxu1 %v2623_v57 }
 0x116   : > { %2395 = vmatmul.mubr.bf16.gmra.mxu1 %v544_v31  ;;  %v2690_v42 = vpop.eup %2689 }
 0x117   : > { %2398 = vmatprep.mubr.bf16.mxu1 %v545_v30  ;;  %v2692_v43 = vpop.eup %2691  ;;  %v549_v44 = vpack.c.bf16 %v2690_v42, %v2688_v41 }
 0x118   : > { %v548_v45 = vpack.c.bf16 %v2692_v43, %v2686_v40  ;;  %v2694_v46 = vpop.eup %2693  ;;  %2471 = vmatpush3.bf16.msra.mxu1 %v2623_v57 }
 0x119   : > { %v2696_v47 = vpop.eup %2695 }
 0x11a   : > { %v550_v48 = vpack.c.bf16 %v2696_v47, %v2694_v46 }
 0x11e   : > { %2399 = vmatmul.mubr.bf16.gmra.mxu1 %v546_v39 }
 0x11f   : > { %2402 = vmatprep.mubr.bf16.mxu1 %v547_v38 }
 0x126   : > { %2403 = vmatmul.mubr.bf16.gmra.mxu1 %v548_v45 }
 0x127   : > { %2406 = vmatprep.mubr.bf16.mxu1 %v549_v44 }
 0x12e   : > { %2407 = vmatmul.mubr.bf16.gmra.mxu1 %v550_v48 }
 0x1b6   : > { %v2380_v58 = vpop.f32.mrf.mxu1 }
 0x1b7   : > { %v663_v62 = vadd.f32 %v2380_v58, %v3026_v59 }
 0x1b8   : > { %v654_v60 = vpop.f32.mrf.mxu1 }
 0x1b9   : > { %v655_v61 = vadd.f32 %v3026_v59, %v654_v60  ;;  %v815_v6 = vmul.f32 0.01, %v663_v62  ;;  %vm783_vm3 = vcmp.ge.f32.partialorder %v663_v62, 0.0 }
 0x1ba   : > { %v2381_v63 = vpop.f32.mrf.mxu1 }
 0x1bb   : > { %v666_v1 = vadd.f32 %v2381_v63, %v3026_v59  ;;  %v813_v3 = vmul.f32 0.01, %v655_v61  ;;  %vm781_vm2 = vcmp.ge.f32.partialorder %v655_v61, 0.0  ;;  %v847_v14 = vsel %vm783_vm3, %v663_v62, %v815_v6 }
 0x1bc   : > { %v657_v2 = vpop.f32.mrf.mxu1 }
 0x1bd   : > { %vm784_vm1 = vcmp.ge.f32.partialorder %v666_v1, 0.0  ;;  %v816_v4 = vmul.f32 0.01, %v666_v1  ;;  %v658_v5 = vadd.f32 %v3026_v59, %v657_v2  ;;  %v845_v12 = vsel %vm781_vm2, %v655_v61, %v813_v3 }
 0x1be   : > { %v2384_v7 = vpop.f32.mrf.mxu1 }
 0x1bf   : > { %vm782_vm4 = vcmp.ge.f32.partialorder %v658_v5, 0.0  ;;  %v814_v8 = vmul.f32 0.01, %v658_v5  ;;  %v848_v9 = vsel %vm784_vm1, %v666_v1, %v816_v4  ;;  %v679_v15 = vadd.f32 %v2384_v7, %v3026_v59 }
 0x1c0   : > { %v670_v10 = vpop.f32.mrf.mxu1  ;;  %v878_v17 = vpack.c.bf16 %v848_v9, %v847_v14 }
 0x1c1   : > { %v671_v11 = vadd.f32 %v3026_v59, %v670_v10  ;;  %v846_v13 = vsel %vm782_vm4, %v658_v5, %v814_v8  ;;  %v819_v23 = vmul.f32 0.01, %v679_v15  ;;  %vm787_vm7 = vcmp.ge.f32.partialorder %v679_v15, 0.0 }
 0x1c2   : > { %v2385_v16 = vpop.f32.mrf.mxu1  ;;  %v877_v18 = vpack.c.bf16 %v846_v13, %v845_v12 }
 0x1c3   : > { %v682_v19 = vadd.f32 %v2385_v16, %v3026_v59  ;;  %v817_v21 = vmul.f32 0.01, %v671_v11  ;;  %vm785_vm6 = vcmp.ge.f32.partialorder %v671_v11, 0.0  ;;  %v851_v35 = vsel %vm787_vm7, %v679_v15, %v819_v23 }
 0x1c4   : > { %v673_v20 = vpop.f32.mrf.mxu1  ;;  %2426 = vmatprep.mubr.bf16.mxu0 %v877_v18 }
 0x1c5   : > { %vm788_vm5 = vcmp.ge.f32.partialorder %v682_v19, 0.0  ;;  %v820_v22 = vmul.f32 0.01, %v682_v19  ;;  %v674_v24 = vadd.f32 %v3026_v59, %v673_v20  ;;  %2427 = vmatmul.mubr.bf16.vlgmr.msra.gmra.mxu0 %v878_v17  ;;  %v849_v30 = vsel %vm785_vm6, %v671_v11, %v817_v21 }
 0x1c6   : > { %v2388_v25 = vpop.f32.mrf.mxu1 }
 0x1c7   : > { %vm786_vm8 = vcmp.ge.f32.partialorder %v674_v24, 0.0  ;;  %v818_v26 = vmul.f32 0.01, %v674_v24  ;;  %v852_v28 = vsel %vm788_vm5, %v682_v19, %v820_v22  ;;  %v695_v32 = vadd.f32 %v2388_v25, %v3026_v59 }
 0x1c8   : > { %v686_v27 = vpop.f32.mrf.mxu1  ;;  %v880_v37 = vpack.c.bf16 %v852_v28, %v851_v35 }
 0x1c9   : > { %v687_v29 = vadd.f32 %v3026_v59, %v686_v27  ;;  %v850_v31 = vsel %vm786_vm8, %v674_v24, %v818_v26  ;;  %v823_v42 = vmul.f32 0.01, %v695_v32  ;;  %vm791_vm11 = vcmp.ge.f32.partialorder %v695_v32, 0.0 }
 0x1ca   : > { %v2389_v33 = vpop.f32.mrf.mxu1  ;;  %v879_v34 = vpack.c.bf16 %v850_v31, %v849_v30 }
 0x1cb   : > { %v698_v36 = vadd.f32 %v2389_v33, %v3026_v59  ;;  %v821_v39 = vmul.f32 0.01, %v687_v29  ;;  %vm789_vm10 = vcmp.ge.f32.partialorder %v687_v29, 0.0  ;;  %v855_v52 = vsel %vm791_vm11, %v695_v32, %v823_v42 }
 0x1cc   : > { %v689_v38 = vpop.f32.mrf.mxu1  ;;  %2430 = vmatprep.mubr.bf16.mxu0 %v879_v34 }
 0x1cd   : > { %vm792_vm9 = vcmp.ge.f32.partialorder %v698_v36, 0.0  ;;  %v824_v40 = vmul.f32 0.01, %v698_v36  ;;  %v690_v41 = vadd.f32 %v3026_v59, %v689_v38  ;;  %2431 = vmatmul.mubr.bf16.gmra.mxu0 %v880_v37  ;;  %v853_v48 = vsel %vm789_vm10, %v687_v29, %v821_v39 }
 0x1ce   : > { %v2392_v43 = vpop.f32.mrf.mxu1 }
 0x1cf   : > { %vm790_vm12 = vcmp.ge.f32.partialorder %v690_v41, 0.0  ;;  %v822_v44 = vmul.f32 0.01, %v690_v41  ;;  %v856_v46 = vsel %vm792_vm9, %v698_v36, %v824_v40  ;;  %v711_v49 = vadd.f32 %v2392_v43, %v3026_v59 }
 0x1d0   : > { %v702_v45 = vpop.f32.mrf.mxu1  ;;  %v882_v54 = vpack.c.bf16 %v856_v46, %v855_v52 }
 0x1d1   : > { %v703_v47 = vadd.f32 %v3026_v59, %v702_v45  ;;  %v854_v0 = vsel %vm790_vm12, %v690_v41, %v822_v44  ;;  %v827_v60 = vmul.f32 0.01, %v711_v49  ;;  %vm795_vm15 = vcmp.ge.f32.partialorder %v711_v49, 0.0 }
 0x1d2   : > { %v2393_v50 = vpop.f32.mrf.mxu1  ;;  %v881_v51 = vpack.c.bf16 %v854_v0, %v853_v48 }
 0x1d3   : > { %v714_v53 = vadd.f32 %v2393_v50, %v3026_v59  ;;  %v825_v56 = vmul.f32 0.01, %v703_v47  ;;  %vm793_vm14 = vcmp.ge.f32.partialorder %v703_v47, 0.0  ;;  %v859_v8 = vsel %vm795_vm15, %v711_v49, %v827_v60 }
 0x1d4   : > { %v705_v55 = vpop.f32.mrf.mxu1  ;;  %2434 = vmatprep.mubr.bf16.mxu0 %v881_v51 }
 0x1d5   : > { %vm796_vm13 = vcmp.ge.f32.partialorder %v714_v53, 0.0  ;;  %v828_v57 = vmul.f32 0.01, %v714_v53  ;;  %v706_v58 = vadd.f32 %v3026_v59, %v705_v55  ;;  %2435 = vmatmul.mubr.bf16.gmra.mxu0 %v882_v54  ;;  %v857_v3 = vsel %vm793_vm14, %v703_v47, %v825_v56 }
 0x1d6   : > { %v2396_v61 = vpop.f32.mrf.mxu1 }
 0x1d7   : > { %vm794_vm0 = vcmp.ge.f32.partialorder %v706_v58, 0.0  ;;  %v826_v62 = vmul.f32 0.01, %v706_v58  ;;  %v860_v1 = vsel %vm796_vm13, %v714_v53, %v828_v57  ;;  %v727_v5 = vadd.f32 %v2396_v61, %v3026_v59 }
 0x1d8   : > { %v718_v63 = vpop.f32.mrf.mxu1  ;;  %v884_v10 = vpack.c.bf16 %v860_v1, %v859_v8 }
 0x1d9   : > { %v719_v2 = vadd.f32 %v3026_v59, %v718_v63  ;;  %v858_v4 = vsel %vm794_vm0, %v706_v58, %v826_v62  ;;  %v831_v15 = vmul.f32 0.01, %v727_v5  ;;  %vm799_vm3 = vcmp.ge.f32.partialorder %v727_v5, 0.0 }
 0x1da   : > { %v2397_v6 = vpop.f32.mrf.mxu1  ;;  %v883_v7 = vpack.c.bf16 %v858_v4, %v857_v3 }
 0x1db   : > { %v730_v9 = vadd.f32 %v2397_v6, %v3026_v59  ;;  %v829_v12 = vmul.f32 0.01, %v719_v2  ;;  %vm797_vm2 = vcmp.ge.f32.partialorder %v719_v2, 0.0  ;;  %v863_v26 = vsel %vm799_vm3, %v727_v5, %v831_v15  ;;  %v2626_v15 = vld [vmem:[%s3337_s2 + $0xf0] sm:$0xff]  }
 0x1dc   : > { %v721_v11 = vpop.f32.mrf.mxu1  ;;  %2438 = vmatprep.mubr.bf16.mxu0 %v883_v7 }
 0x1dd   : > { %vm800_vm1 = vcmp.ge.f32.partialorder %v730_v9, 0.0  ;;  %v832_v13 = vmul.f32 0.01, %v730_v9  ;;  %v722_v14 = vadd.f32 %v3026_v59, %v721_v11  ;;  %2439 = vmatmul.mubr.bf16.gmra.mxu0 %v884_v10  ;;  %v861_v21 = vsel %vm797_vm2, %v719_v2, %v829_v12 }
 0x1de   : > { %v2400_v16 = vpop.f32.mrf.mxu1 }
 0x1df   : > { %vm798_vm4 = vcmp.ge.f32.partialorder %v722_v14, 0.0  ;;  %v830_v18 = vmul.f32 0.01, %v722_v14  ;;  %v864_v19 = vsel %vm800_vm1, %v730_v9, %v832_v13  ;;  %v743_v24 = vadd.f32 %v2400_v16, %v3026_v59  ;;  %v2627_v16 = vld [vmem:[%s3337_s2 + $0xe8] sm:$0xff]  }
 0x1e0   : > { %v734_v17 = vpop.f32.mrf.mxu1  ;;  %v886_v28 = vpack.c.bf16 %v864_v19, %v863_v26  ;;  %v2630_v19 = vld [vmem:[%s3337_s2 + $0xd0] sm:$0xff]  }
 0x1e1   : > { %v735_v20 = vadd.f32 %v3026_v59, %v734_v17  ;;  %v862_v22 = vsel %vm798_vm4, %v722_v14, %v830_v18  ;;  %v835_v33 = vmul.f32 0.01, %v743_v24  ;;  %vm803_vm7 = vcmp.ge.f32.partialorder %v743_v24, 0.0  ;;  %v2624_v14 = vld [vmem:[%s3337_s2 + $0x80] sm:$0xff]   ;;  %v2629_v17 = vld [vmem:[%s3337_s2 + $0xd8] sm:$0xff]  }
 0x1e2   : > { %v2401_v23 = vpop.f32.mrf.mxu1  ;;  %v885_v25 = vpack.c.bf16 %v862_v22, %v861_v21  ;;  %2472 = vmatprep.subr.bf16.mxu1 %v2624_v14  ;;  %v2628_v18 = vld [vmem:[%s3337_s2 + $0xe0] sm:$0xff]  }
 0x1e3   : > { %v746_v27 = vadd.f32 %v2401_v23, %v3026_v59  ;;  %v833_v30 = vmul.f32 0.01, %v735_v20  ;;  %vm801_vm6 = vcmp.ge.f32.partialorder %v735_v20, 0.0  ;;  %v867_v44 = vsel %vm803_vm7, %v743_v24, %v835_v33  ;;  %2473 = vmatpush3.bf16.msra.mxu1 %v2624_v14  ;;  %v3087_v22 = vld [vmem:[%s3338_s3 + $0x2] ss:$0 sm:$0xff] }
 0x1e4   : > { %v737_v29 = vpop.f32.mrf.mxu1  ;;  %2442 = vmatprep.mubr.bf16.mxu0 %v885_v25 }
 0x1e5   : > { %vm804_vm5 = vcmp.ge.f32.partialorder %v746_v27, 0.0  ;;  %v836_v31 = vmul.f32 0.01, %v746_v27  ;;  %v738_v32 = vadd.f32 %v3026_v59, %v737_v29  ;;  %2443 = vmatmul.mubr.bf16.gmra.mxu0 %v886_v28  ;;  %v865_v39 = vsel %vm801_vm6, %v735_v20, %v833_v30  ;;  %v2631_v20 = vld [vmem:[%s3337_s2 + $0xc8] sm:$0xff]  }
 0x1e6   : > { %v2404_v34 = vpop.f32.mrf.mxu1 }
 0x1e7   : > { %vm802_vm8 = vcmp.ge.f32.partialorder %v738_v32, 0.0  ;;  %v834_v35 = vmul.f32 0.01, %v738_v32  ;;  %v868_v37 = vsel %vm804_vm5, %v746_v27, %v836_v31  ;;  %v759_v41 = vadd.f32 %v2404_v34, %v3026_v59 }
 0x1e8   : > { %v750_v36 = vpop.f32.mrf.mxu1  ;;  %v888_v46 = vpack.c.bf16 %v868_v37, %v867_v44 }
 0x1e9   : > { %v751_v38 = vadd.f32 %v3026_v59, %v750_v36  ;;  %v866_v40 = vsel %vm802_vm8, %v738_v32, %v834_v35  ;;  %v839_v50 = vmul.f32 0.01, %v759_v41  ;;  %vm807_vm11 = vcmp.ge.f32.partialorder %v759_v41, 0.0 }
 0x1ea   : > { %v2405_v42 = vpop.f32.mrf.mxu1  ;;  %v887_v43 = vpack.c.bf16 %v866_v40, %v865_v39 }
 0x1eb   : > { %v762_v45 = vadd.f32 %v2405_v42, %v3026_v59  ;;  %v837_v48 = vmul.f32 0.01, %v751_v38  ;;  %vm805_vm10 = vcmp.ge.f32.partialorder %v751_v38, 0.0  ;;  %v871_v62 = vsel %vm807_vm11, %v759_v41, %v839_v50 }
 0x1ec   : > { %v753_v47 = vpop.f32.mrf.mxu1  ;;  %2446 = vmatprep.mubr.bf16.mxu0 %v887_v43 }
 0x1ed   : > { %vm808_vm9 = vcmp.ge.f32.partialorder %v762_v45, 0.0  ;;  %v840_v0 = vmul.f32 0.01, %v762_v45  ;;  %v754_v49 = vadd.f32 %v3026_v59, %v753_v47  ;;  %2447 = vmatmul.mubr.bf16.gmra.mxu0 %v888_v46  ;;  %v869_v56 = vsel %vm805_vm10, %v751_v38, %v837_v48 }
 0x1ee   : > { %v2408_v51 = vpop.f32.mrf.mxu1 }
 0x1ef   : > { %vm806_vm12 = vcmp.ge.f32.partialorder %v754_v49, 0.0  ;;  %v838_v52 = vmul.f32 0.01, %v754_v49  ;;  %v872_v54 = vsel %vm808_vm9, %v762_v45, %v840_v0  ;;  %v775_v58 = vadd.f32 %v2408_v51, %v3026_v59 }
 0x1f0   : > { %v766_v53 = vpop.f32.mrf.mxu1  ;;  %v890_v1 = vpack.c.bf16 %v872_v54, %v871_v62 }
 0x1f1   : > { %v767_v55 = vadd.f32 %v3026_v59, %v766_v53  ;;  %v870_v57 = vsel %vm806_vm12, %v754_v49, %v838_v52  ;;  %v843_v6 = vmul.f32 0.01, %v775_v58  ;;  %vm811_vm15 = vcmp.ge.f32.partialorder %v775_v58, 0.0 }
 0x1f2   : > { %v2409_v60 = vpop.f32.mrf.mxu1  ;;  %v889_v61 = vpack.c.bf16 %v870_v57, %v869_v56 }
 0x1f3   : > { %v778_v63 = vadd.f32 %v2409_v60, %v3026_v59  ;;  %v841_v3 = vmul.f32 0.01, %v767_v55  ;;  %vm809_vm14 = vcmp.ge.f32.partialorder %v767_v55, 0.0  ;;  %v875_v12 = vsel %vm811_vm15, %v775_v58, %v843_v6 }
 0x1f4   : > { %v769_v2 = vpop.f32.mrf.mxu1  ;;  %2450 = vmatprep.mubr.bf16.mxu0 %v889_v61 }
 0x1f5   : > { %vm812_vm13 = vcmp.ge.f32.partialorder %v778_v63, 0.0  ;;  %v844_v4 = vmul.f32 0.01, %v778_v63  ;;  %v770_v5 = vadd.f32 %v3026_v59, %v769_v2  ;;  %2451 = vmatmul.mubr.bf16.gmra.mxu0 %v890_v1  ;;  %v873_v9 = vsel %vm809_vm14, %v767_v55, %v841_v3  ;;  %v2625_v59 = vld [vmem:[%s3337_s2 + $0xf8] sm:$0xff]  }
 0x1f6   : > { %2506 = vmatprep.subr.bf16.mxu0 %v2625_v59 }
 0x1f7   : > { %vm810_vm0 = vcmp.ge.f32.partialorder %v770_v5, 0.0  ;;  %v842_v7 = vmul.f32 0.01, %v770_v5  ;;  %v876_v8 = vsel %vm812_vm13, %v778_v63, %v844_v4  ;;  %2507 = vmatpush3.bf16.msra.mxu0 %v2625_v59 }
 0x1f8   : > { %v892_v13 = vpack.c.bf16 %v876_v8, %v875_v12  ;;  %2508 = vmatprep.subr.bf16.mxu0 %v2626_v15 }
 0x1f9   : > { %v874_v10 = vsel %vm810_vm0, %v770_v5, %v842_v7 }
 0x1fa   : > { %v891_v11 = vpack.c.bf16 %v874_v10, %v873_v9 }
 0x1fb   : > { %2509 = vmatpush3.bf16.msra.mxu0 %v2626_v15 }
 0x1fc   : > { %2454 = vmatprep.mubr.bf16.mxu0 %v891_v11  ;;  %2510 = vmatprep.subr.bf16.mxu0 %v2627_v16 }
 0x1fd   : > { %2455 = vmatmul.mubr.bf16.gmra.mxu0 %v892_v13 }
 0x1ff   : > { %2511 = vmatpush3.bf16.msra.mxu0 %v2627_v16 }
 0x200   : > { %2512 = vmatprep.subr.bf16.mxu0 %v2628_v18 }
 0x203   : > { %2513 = vmatpush3.bf16.msra.mxu0 %v2628_v18 }
 0x204   : > { %2514 = vmatprep.subr.bf16.mxu0 %v2629_v17 }
 0x207   : > { %2515 = vmatpush3.bf16.msra.mxu0 %v2629_v17 }
 0x208   : > { %2516 = vmatprep.subr.bf16.mxu0 %v2630_v19 }
 0x20b   : > { %2517 = vmatpush3.bf16.msra.mxu0 %v2630_v19 }
 0x20c   : > { %2518 = vmatprep.subr.bf16.mxu0 %v2631_v20 }
 0x20f   : > { %2519 = vmatpush3.bf16.msra.mxu0 %v2631_v20 }
 0x285   : > { %v2428_v21 = vpop.f32.mrf.mxu0 }
 0x286   : > { %v1006_v25 = vadd.f32 %v2428_v21, %v3087_v22 }
 0x287   : > { %v997_v24 = vpop.f32.mrf.mxu0 }
 0x288   : > { %v998_v23 = vadd.f32 %v3087_v22, %v997_v24  ;;  %v1158_v32 = vmul.f32 0.01, %v1006_v25  ;;  %vm1126_vm3 = vcmp.ge.f32.partialorder %v1006_v25, 0.0 }
 0x289   : > { %v2429_v26 = vpop.f32.mrf.mxu0 }
 0x28a   : > { %v1009_v27 = vadd.f32 %v2429_v26, %v3087_v22  ;;  %v1156_v29 = vmul.f32 0.01, %v998_v23  ;;  %vm1124_vm2 = vcmp.ge.f32.partialorder %v998_v23, 0.0  ;;  %v1190_v40 = vsel %vm1126_vm3, %v1006_v25, %v1158_v32 }
 0x28b   : > { %v1000_v28 = vpop.f32.mrf.mxu0 }
 0x28c   : > { %vm1127_vm1 = vcmp.ge.f32.partialorder %v1009_v27, 0.0  ;;  %v1159_v30 = vmul.f32 0.01, %v1009_v27  ;;  %v1001_v31 = vadd.f32 %v3087_v22, %v1000_v28  ;;  %v1188_v38 = vsel %vm1124_vm2, %v998_v23, %v1156_v29 }
 0x28d   : > { %v2432_v33 = vpop.f32.mrf.mxu0 }
 0x28e   : > { %vm1125_vm4 = vcmp.ge.f32.partialorder %v1001_v31, 0.0  ;;  %v1157_v34 = vmul.f32 0.01, %v1001_v31  ;;  %v1191_v35 = vsel %vm1127_vm1, %v1009_v27, %v1159_v30  ;;  %v1022_v41 = vadd.f32 %v2432_v33, %v3087_v22 }
 0x28f   : > { %v1013_v36 = vpop.f32.mrf.mxu0  ;;  %v1221_v44 = vpack.c.bf16 %v1191_v35, %v1190_v40 }
 0x290   : > { %v1014_v37 = vadd.f32 %v3087_v22, %v1013_v36  ;;  %v1189_v39 = vsel %vm1125_vm4, %v1001_v31, %v1157_v34  ;;  %v1162_v49 = vmul.f32 0.01, %v1022_v41  ;;  %vm1130_vm7 = vcmp.ge.f32.partialorder %v1022_v41, 0.0 }
 0x291   : > { %v2433_v42 = vpop.f32.mrf.mxu0  ;;  %v1220_v43 = vpack.c.bf16 %v1189_v39, %v1188_v38 }
 0x292   : > { %v1025_v45 = vadd.f32 %v2433_v42, %v3087_v22  ;;  %v1160_v47 = vmul.f32 0.01, %v1014_v37  ;;  %vm1128_vm6 = vcmp.ge.f32.partialorder %v1014_v37, 0.0  ;;  %v1194_v61 = vsel %vm1130_vm7, %v1022_v41, %v1162_v49 }
 0x293   : > { %v1016_v46 = vpop.f32.mrf.mxu0  ;;  %2474 = vmatprep.mubr.bf16.mxu1 %v1220_v43 }
 0x294   : > { %vm1131_vm5 = vcmp.ge.f32.partialorder %v1025_v45, 0.0  ;;  %v1163_v48 = vmul.f32 0.01, %v1025_v45  ;;  %v1017_v0 = vadd.f32 %v3087_v22, %v1016_v46  ;;  %2475 = vmatmul.mubr.bf16.vlgmr.msra.gmra.mxu1 %v1221_v44  ;;  %v1192_v55 = vsel %vm1128_vm6, %v1014_v37, %v1160_v47 }
 0x295   : > { %v2436_v50 = vpop.f32.mrf.mxu0 }
 0x296   : > { %vm1129_vm8 = vcmp.ge.f32.partialorder %v1017_v0, 0.0  ;;  %v1161_v51 = vmul.f32 0.01, %v1017_v0  ;;  %v1195_v53 = vsel %vm1131_vm5, %v1025_v45, %v1163_v48  ;;  %v1038_v57 = vadd.f32 %v2436_v50, %v3087_v22 }
 0x297   : > { %v1029_v52 = vpop.f32.mrf.mxu0  ;;  %v1223_v63 = vpack.c.bf16 %v1195_v53, %v1194_v61 }
 0x298   : > { %v1030_v54 = vadd.f32 %v3087_v22, %v1029_v52  ;;  %v1193_v56 = vsel %vm1129_vm8, %v1017_v0, %v1161_v51  ;;  %v1166_v5 = vmul.f32 0.01, %v1038_v57  ;;  %vm1134_vm11 = vcmp.ge.f32.partialorder %v1038_v57, 0.0 }
 0x299   : > { %v2437_v58 = vpop.f32.mrf.mxu0  ;;  %v1222_v60 = vpack.c.bf16 %v1193_v56, %v1192_v55 }
 0x29a   : > { %v1041_v62 = vadd.f32 %v2437_v58, %v3087_v22  ;;  %v1164_v2 = vmul.f32 0.01, %v1030_v54  ;;  %vm1132_vm10 = vcmp.ge.f32.partialorder %v1030_v54, 0.0  ;;  %v1198_v15 = vsel %vm1134_vm11, %v1038_v57, %v1166_v5 }
 0x29b   : > { %v1032_v1 = vpop.f32.mrf.mxu0  ;;  %2478 = vmatprep.mubr.bf16.mxu1 %v1222_v60 }
 0x29c   : > { %vm1135_vm9 = vcmp.ge.f32.partialorder %v1041_v62, 0.0  ;;  %v1167_v3 = vmul.f32 0.01, %v1041_v62  ;;  %v1033_v4 = vadd.f32 %v3087_v22, %v1032_v1  ;;  %2479 = vmatmul.mubr.bf16.gmra.mxu1 %v1223_v63  ;;  %v1196_v11 = vsel %vm1132_vm10, %v1030_v54, %v1164_v2 }
 0x29d   : > { %v2440_v6 = vpop.f32.mrf.mxu0 }
 0x29e   : > { %vm1133_vm12 = vcmp.ge.f32.partialorder %v1033_v4, 0.0  ;;  %v1165_v7 = vmul.f32 0.01, %v1033_v4  ;;  %v1199_v9 = vsel %vm1135_vm9, %v1041_v62, %v1167_v3  ;;  %v1054_v13 = vadd.f32 %v2440_v6, %v3087_v22 }
 0x29f   : > { %v1045_v8 = vpop.f32.mrf.mxu0  ;;  %v1225_v18 = vpack.c.bf16 %v1199_v9, %v1198_v15 }
 0x2a0   : > { %v1046_v10 = vadd.f32 %v3087_v22, %v1045_v8  ;;  %v1197_v12 = vsel %vm1133_vm12, %v1033_v4, %v1165_v7  ;;  %v1170_v24 = vmul.f32 0.01, %v1054_v13  ;;  %vm1138_vm15 = vcmp.ge.f32.partialorder %v1054_v13, 0.0 }
 0x2a1   : > { %v2441_v14 = vpop.f32.mrf.mxu0  ;;  %v1224_v59 = vpack.c.bf16 %v1197_v12, %v1196_v11 }
 0x2a2   : > { %v1057_v16 = vadd.f32 %v2441_v14, %v3087_v22  ;;  %v1168_v19 = vmul.f32 0.01, %v1046_v10  ;;  %vm1136_vm14 = vcmp.ge.f32.partialorder %v1046_v10, 0.0  ;;  %v1202_v34 = vsel %vm1138_vm15, %v1054_v13, %v1170_v24 }
 0x2a3   : > { %v1048_v17 = vpop.f32.mrf.mxu0  ;;  %2482 = vmatprep.mubr.bf16.mxu1 %v1224_v59 }
 0x2a4   : > { %vm1139_vm13 = vcmp.ge.f32.partialorder %v1057_v16, 0.0  ;;  %v1171_v20 = vmul.f32 0.01, %v1057_v16  ;;  %v1049_v21 = vadd.f32 %v3087_v22, %v1048_v17  ;;  %2483 = vmatmul.mubr.bf16.gmra.mxu1 %v1225_v18  ;;  %v1200_v29 = vsel %vm1136_vm14, %v1046_v10, %v1168_v19 }
 0x2a5   : > { %v2444_v23 = vpop.f32.mrf.mxu0 }
 0x2a6   : > { %vm1137_vm0 = vcmp.ge.f32.partialorder %v1049_v21, 0.0  ;;  %v1169_v25 = vmul.f32 0.01, %v1049_v21  ;;  %v1203_v27 = vsel %vm1139_vm13, %v1057_v16, %v1171_v20  ;;  %v1070_v31 = vadd.f32 %v2444_v23, %v3087_v22 }
 0x2a7   : > { %v1061_v26 = vpop.f32.mrf.mxu0  ;;  %v1227_v36 = vpack.c.bf16 %v1203_v27, %v1202_v34 }
 0x2a8   : > { %v1062_v28 = vadd.f32 %v3087_v22, %v1061_v26  ;;  %v1201_v30 = vsel %vm1137_vm0, %v1049_v21, %v1169_v25  ;;  %v1174_v41 = vmul.f32 0.01, %v1070_v31  ;;  %vm1142_vm3 = vcmp.ge.f32.partialorder %v1070_v31, 0.0 }
 0x2a9   : > { %v2445_v32 = vpop.f32.mrf.mxu0  ;;  %v1226_v33 = vpack.c.bf16 %v1201_v30, %v1200_v29 }
 0x2aa   : > { %v1073_v35 = vadd.f32 %v2445_v32, %v3087_v22  ;;  %v1172_v38 = vmul.f32 0.01, %v1062_v28  ;;  %vm1140_vm2 = vcmp.ge.f32.partialorder %v1062_v28, 0.0  ;;  %v1206_v51 = vsel %vm1142_vm3, %v1070_v31, %v1174_v41  ;;  %v3127_v41 = vld [vmem:[%s3338_s3 + $0x3] ss:$0 sm:$0xff] }
 0x2ab   : > { %v1064_v37 = vpop.f32.mrf.mxu0  ;;  %2486 = vmatprep.mubr.bf16.mxu1 %v1226_v33 }
 0x2ac   : > { %vm1143_vm1 = vcmp.ge.f32.partialorder %v1073_v35, 0.0  ;;  %v1175_v39 = vmul.f32 0.01, %v1073_v35  ;;  %v1065_v40 = vadd.f32 %v3087_v22, %v1064_v37  ;;  %2487 = vmatmul.mubr.bf16.gmra.mxu1 %v1227_v36  ;;  %v1204_v47 = vsel %vm1140_vm2, %v1062_v28, %v1172_v38 }
 0x2ad   : > { %v2448_v42 = vpop.f32.mrf.mxu0 }
 0x2ae   : > { %vm1141_vm4 = vcmp.ge.f32.partialorder %v1065_v40, 0.0  ;;  %v1173_v43 = vmul.f32 0.01, %v1065_v40  ;;  %v1207_v45 = vsel %vm1143_vm1, %v1073_v35, %v1175_v39  ;;  %v1086_v0 = vadd.f32 %v2448_v42, %v3087_v22 }
 0x2af   : > { %v1077_v44 = vpop.f32.mrf.mxu0  ;;  %v1229_v53 = vpack.c.bf16 %v1207_v45, %v1206_v51 }
 0x2b0   : > { %v1078_v46 = vadd.f32 %v3087_v22, %v1077_v44  ;;  %v1205_v48 = vsel %vm1141_vm4, %v1065_v40, %v1173_v43  ;;  %v1178_v58 = vmul.f32 0.01, %v1086_v0  ;;  %vm1146_vm7 = vcmp.ge.f32.partialorder %v1086_v0, 0.0  ;;  %v2632_v40 = vld [vmem:[%s3337_s2 + $0xc0] sm:$0xff]  }
 0x2b1   : > { %v2449_v49 = vpop.f32.mrf.mxu0  ;;  %v1228_v50 = vpack.c.bf16 %v1205_v48, %v1204_v47  ;;  %2520 = vmatprep.subr.bf16.mxu0 %v2632_v40 }
 0x2b2   : > { %v1089_v52 = vadd.f32 %v2449_v49, %v3087_v22  ;;  %v1176_v55 = vmul.f32 0.01, %v1078_v46  ;;  %vm1144_vm6 = vcmp.ge.f32.partialorder %v1078_v46, 0.0  ;;  %v1210_v7 = vsel %vm1146_vm7, %v1086_v0, %v1178_v58  ;;  %2521 = vmatpush3.bf16.msra.mxu0 %v2632_v40 }
 0x2b3   : > { %v1080_v54 = vpop.f32.mrf.mxu0  ;;  %2490 = vmatprep.mubr.bf16.mxu1 %v1228_v50 }
 0x2b4   : > { %vm1147_vm5 = vcmp.ge.f32.partialorder %v1089_v52, 0.0  ;;  %v1179_v56 = vmul.f32 0.01, %v1089_v52  ;;  %v1081_v57 = vadd.f32 %v3087_v22, %v1080_v54  ;;  %2491 = vmatmul.mubr.bf16.gmra.mxu1 %v1229_v53  ;;  %v1208_v2 = vsel %vm1144_vm6, %v1078_v46, %v1176_v55 }
 0x2b5   : > { %v2452_v60 = vpop.f32.mrf.mxu0 }
 0x2b6   : > { %vm1145_vm8 = vcmp.ge.f32.partialorder %v1081_v57, 0.0  ;;  %v1177_v61 = vmul.f32 0.01, %v1081_v57  ;;  %v1211_v63 = vsel %vm1147_vm5, %v1089_v52, %v1179_v56  ;;  %v1102_v4 = vadd.f32 %v2452_v60, %v3087_v22 }
 0x2b7   : > { %v1093_v62 = vpop.f32.mrf.mxu0  ;;  %v1231_v9 = vpack.c.bf16 %v1211_v63, %v1210_v7 }
 0x2b8   : > { %v1094_v1 = vadd.f32 %v3087_v22, %v1093_v62  ;;  %v1209_v3 = vsel %vm1145_vm8, %v1081_v57, %v1177_v61  ;;  %v1182_v14 = vmul.f32 0.01, %v1102_v4  ;;  %vm1150_vm11 = vcmp.ge.f32.partialorder %v1102_v4, 0.0 }
 0x2b9   : > { %v2453_v5 = vpop.f32.mrf.mxu0  ;;  %v1230_v6 = vpack.c.bf16 %v1209_v3, %v1208_v2 }
 0x2ba   : > { %v1105_v8 = vadd.f32 %v2453_v5, %v3087_v22  ;;  %v1180_v11 = vmul.f32 0.01, %v1094_v1  ;;  %vm1148_vm10 = vcmp.ge.f32.partialorder %v1094_v1, 0.0  ;;  %v1214_v25 = vsel %vm1150_vm11, %v1102_v4, %v1182_v14 }
 0x2bb   : > { %v1096_v10 = vpop.f32.mrf.mxu0  ;;  %2494 = vmatprep.mubr.bf16.mxu1 %v1230_v6 }
 0x2bc   : > { %vm1151_vm9 = vcmp.ge.f32.partialorder %v1105_v8, 0.0  ;;  %v1183_v12 = vmul.f32 0.01, %v1105_v8  ;;  %v1097_v13 = vadd.f32 %v3087_v22, %v1096_v10  ;;  %2495 = vmatmul.mubr.bf16.gmra.mxu1 %v1231_v9  ;;  %v1212_v19 = vsel %vm1148_vm10, %v1094_v1, %v1180_v11 }
 0x2bd   : > { %v2456_v59 = vpop.f32.mrf.mxu0 }
 0x2be   : > { %vm1149_vm12 = vcmp.ge.f32.partialorder %v1097_v13, 0.0  ;;  %v1181_v15 = vmul.f32 0.01, %v1097_v13  ;;  %v1215_v18 = vsel %vm1151_vm9, %v1105_v8, %v1183_v12  ;;  %v1118_v21 = vadd.f32 %v2456_v59, %v3087_v22 }
 0x2bf   : > { %v1109_v16 = vpop.f32.mrf.mxu0  ;;  %v1233_v27 = vpack.c.bf16 %v1215_v18, %v1214_v25 }
 0x2c0   : > { %v1110_v17 = vadd.f32 %v3087_v22, %v1109_v16  ;;  %v1213_v20 = vsel %vm1149_vm12, %v1097_v13, %v1181_v15  ;;  %v1186_v32 = vmul.f32 0.01, %v1118_v21  ;;  %vm1154_vm15 = vcmp.ge.f32.partialorder %v1118_v21, 0.0 }
 0x2c1   : > { %v2457_v24 = vpop.f32.mrf.mxu0  ;;  %v1232_v23 = vpack.c.bf16 %v1213_v20, %v1212_v19 }
 0x2c2   : > { %v1121_v26 = vadd.f32 %v2457_v24, %v3087_v22  ;;  %v1184_v29 = vmul.f32 0.01, %v1110_v17  ;;  %vm1152_vm14 = vcmp.ge.f32.partialorder %v1110_v17, 0.0  ;;  %v1218_v38 = vsel %vm1154_vm15, %v1118_v21, %v1186_v32 }
 0x2c3   : > { %v1112_v28 = vpop.f32.mrf.mxu0  ;;  %2498 = vmatprep.mubr.bf16.mxu1 %v1232_v23 }
 0x2c4   : > { %vm1155_vm13 = vcmp.ge.f32.partialorder %v1121_v26, 0.0  ;;  %v1187_v30 = vmul.f32 0.01, %v1121_v26  ;;  %v1113_v31 = vadd.f32 %v3087_v22, %v1112_v28  ;;  %2499 = vmatmul.mubr.bf16.gmra.mxu1 %v1233_v27  ;;  %v1216_v35 = vsel %vm1152_vm14, %v1110_v17, %v1184_v29 }
 0x2c6   : > { %vm1153_vm0 = vcmp.ge.f32.partialorder %v1113_v31, 0.0  ;;  %v1185_v33 = vmul.f32 0.01, %v1113_v31  ;;  %v1219_v34 = vsel %vm1155_vm13, %v1121_v26, %v1187_v30 }
 0x2c7   : > { %v1235_v39 = vpack.c.bf16 %v1219_v34, %v1218_v38 }
 0x2c8   : > { %v1217_v36 = vsel %vm1153_vm0, %v1113_v31, %v1185_v33 }
 0x2c9   : > { %v1234_v37 = vpack.c.bf16 %v1217_v36, %v1216_v35 }
 0x2cb   : > { %2502 = vmatprep.mubr.bf16.mxu1 %v1234_v37 }
 0x2cc   : > { %2503 = vmatmul.mubr.bf16.gmra.mxu1 %v1235_v39 }
 0x354   : > { %v2476_v22 = vpop.f32.mrf.mxu1 }
 0x355   : > { %v1349_v44 = vadd.f32 %v2476_v22, %v3127_v41 }
 0x356   : > { %v1340_v42 = vpop.f32.mrf.mxu1 }
 0x357   : > { %v1341_v43 = vadd.f32 %v3127_v41, %v1340_v42  ;;  %v1501_v50 = vmul.f32 0.01, %v1349_v44  ;;  %vm1469_vm3 = vcmp.ge.f32.partialorder %v1349_v44, 0.0 }
 0x358   : > { %v2477_v45 = vpop.f32.mrf.mxu1 }
 0x359   : > { %v1352_v46 = vadd.f32 %v2477_v45, %v3127_v41  ;;  %v1499_v48 = vmul.f32 0.01, %v1341_v43  ;;  %vm1467_vm2 = vcmp.ge.f32.partialorder %v1341_v43, 0.0  ;;  %v1533_v58 = vsel %vm1469_vm3, %v1349_v44, %v1501_v50 }
 0x35a   : > { %v1343_v47 = vpop.f32.mrf.mxu1 }
 0x35b   : > { %vm1470_vm1 = vcmp.ge.f32.partialorder %v1352_v46, 0.0  ;;  %v1502_v0 = vmul.f32 0.01, %v1352_v46  ;;  %v1344_v49 = vadd.f32 %v3127_v41, %v1343_v47  ;;  %v1531_v56 = vsel %vm1467_vm2, %v1341_v43, %v1499_v48 }
 0x35c   : > { %v2480_v51 = vpop.f32.mrf.mxu1 }
 0x35d   : > { %vm1468_vm4 = vcmp.ge.f32.partialorder %v1344_v49, 0.0  ;;  %v1500_v52 = vmul.f32 0.01, %v1344_v49  ;;  %v1534_v53 = vsel %vm1470_vm1, %v1352_v46, %v1502_v0  ;;  %v1365_v60 = vadd.f32 %v2480_v51, %v3127_v41 }
 0x35e   : > { %v1356_v54 = vpop.f32.mrf.mxu1  ;;  %v1564_v63 = vpack.c.bf16 %v1534_v53, %v1533_v58 }
 0x35f   : > { %v1357_v55 = vadd.f32 %v3127_v41, %v1356_v54  ;;  %v1532_v57 = vsel %vm1468_vm4, %v1344_v49, %v1500_v52  ;;  %v1505_v6 = vmul.f32 0.01, %v1365_v60  ;;  %vm1473_vm7 = vcmp.ge.f32.partialorder %v1365_v60, 0.0 }
 0x360   : > { %v2481_v61 = vpop.f32.mrf.mxu1  ;;  %v1563_v62 = vpack.c.bf16 %v1532_v57, %v1531_v56 }
 0x361   : > { %v1368_v1 = vadd.f32 %v2481_v61, %v3127_v41  ;;  %v1503_v3 = vmul.f32 0.01, %v1357_v55  ;;  %vm1471_vm6 = vcmp.ge.f32.partialorder %v1357_v55, 0.0  ;;  %v1537_v16 = vsel %vm1473_vm7, %v1365_v60, %v1505_v6 }
 0x362   : > { %v1359_v2 = vpop.f32.mrf.mxu1  ;;  %2522 = vmatprep.mubr.bf16.mxu0 %v1563_v62 }
 0x363   : > { %vm1474_vm5 = vcmp.ge.f32.partialorder %v1368_v1, 0.0  ;;  %v1506_v4 = vmul.f32 0.01, %v1368_v1  ;;  %v1360_v5 = vadd.f32 %v3127_v41, %v1359_v2  ;;  %2523 = vmatmul.mubr.bf16.vlgmr.msra.gmra.mxu0 %v1564_v63  ;;  %v1535_v12 = vsel %vm1471_vm6, %v1357_v55, %v1503_v3 }
 0x364   : > { %v2484_v7 = vpop.f32.mrf.mxu1 }
 0x365   : > { %vm1472_vm8 = vcmp.ge.f32.partialorder %v1360_v5, 0.0  ;;  %v1504_v8 = vmul.f32 0.01, %v1360_v5  ;;  %v1538_v10 = vsel %vm1474_vm5, %v1368_v1, %v1506_v4  ;;  %v1381_v14 = vadd.f32 %v2484_v7, %v3127_v41 }
 0x366   : > { %v1372_v9 = vpop.f32.mrf.mxu1  ;;  %v1566_v17 = vpack.c.bf16 %v1538_v10, %v1537_v16 }
 0x367   : > { %v1373_v11 = vadd.f32 %v3127_v41, %v1372_v9  ;;  %v1536_v13 = vsel %vm1472_vm8, %v1360_v5, %v1504_v8  ;;  %v1509_v23 = vmul.f32 0.01, %v1381_v14  ;;  %vm1477_vm11 = vcmp.ge.f32.partialorder %v1381_v14, 0.0 }
 0x368   : > { %v2485_v59 = vpop.f32.mrf.mxu1  ;;  %v1565_v15 = vpack.c.bf16 %v1536_v13, %v1535_v12 }
 0x369   : > { %v1384_v18 = vadd.f32 %v2485_v59, %v3127_v41  ;;  %v1507_v20 = vmul.f32 0.01, %v1373_v11  ;;  %vm1475_vm10 = vcmp.ge.f32.partialorder %v1373_v11, 0.0  ;;  %v1541_v35 = vsel %vm1477_vm11, %v1381_v14, %v1509_v23 }
 0x36a   : > { %v1375_v19 = vpop.f32.mrf.mxu1  ;;  %2526 = vmatprep.mubr.bf16.mxu0 %v1565_v15 }
 0x36b   : > { %vm1478_vm9 = vcmp.ge.f32.partialorder %v1384_v18, 0.0  ;;  %v1510_v21 = vmul.f32 0.01, %v1384_v18  ;;  %v1376_v24 = vadd.f32 %v3127_v41, %v1375_v19  ;;  %2527 = vmatmul.mubr.bf16.gmra.mxu0 %v1566_v17  ;;  %v1539_v30 = vsel %vm1475_vm10, %v1373_v11, %v1507_v20 }
 0x36c   : > { %v2488_v25 = vpop.f32.mrf.mxu1 }
 0x36d   : > { %vm1476_vm12 = vcmp.ge.f32.partialorder %v1376_v24, 0.0  ;;  %v1508_v26 = vmul.f32 0.01, %v1376_v24  ;;  %v1542_v28 = vsel %vm1478_vm9, %v1384_v18, %v1510_v21  ;;  %v1397_v32 = vadd.f32 %v2488_v25, %v3127_v41 }
 0x36e   : > { %v1388_v27 = vpop.f32.mrf.mxu1  ;;  %v1568_v37 = vpack.c.bf16 %v1542_v28, %v1541_v35 }
 0x36f   : > { %v1389_v29 = vadd.f32 %v3127_v41, %v1388_v27  ;;  %v1540_v31 = vsel %vm1476_vm12, %v1376_v24, %v1508_v26  ;;  %v1513_v42 = vmul.f32 0.01, %v1397_v32  ;;  %vm1481_vm15 = vcmp.ge.f32.partialorder %v1397_v32, 0.0 }
 0x370   : > { %v2489_v33 = vpop.f32.mrf.mxu1  ;;  %v1567_v34 = vpack.c.bf16 %v1540_v31, %v1539_v30 }
 0x371   : > { %v1400_v36 = vadd.f32 %v2489_v33, %v3127_v41  ;;  %v1511_v39 = vmul.f32 0.01, %v1389_v29  ;;  %vm1479_vm14 = vcmp.ge.f32.partialorder %v1389_v29, 0.0  ;;  %v1545_v52 = vsel %vm1481_vm15, %v1397_v32, %v1513_v42 }
 0x372   : > { %v1391_v38 = vpop.f32.mrf.mxu1  ;;  %2530 = vmatprep.mubr.bf16.mxu0 %v1567_v34 }
 0x373   : > { %vm1482_vm13 = vcmp.ge.f32.partialorder %v1400_v36, 0.0  ;;  %v1514_v40 = vmul.f32 0.01, %v1400_v36  ;;  %v1392_v22 = vadd.f32 %v3127_v41, %v1391_v38  ;;  %2531 = vmatmul.mubr.bf16.gmra.mxu0 %v1568_v37  ;;  %v1543_v48 = vsel %vm1479_vm14, %v1389_v29, %v1511_v39 }
 0x374   : > { %v2492_v43 = vpop.f32.mrf.mxu1 }
 0x375   : > { %vm1480_vm0 = vcmp.ge.f32.partialorder %v1392_v22, 0.0  ;;  %v1512_v44 = vmul.f32 0.01, %v1392_v22  ;;  %v1546_v46 = vsel %vm1482_vm13, %v1400_v36, %v1514_v40  ;;  %v1413_v49 = vadd.f32 %v2492_v43, %v3127_v41 }
 0x376   : > { %v1404_v45 = vpop.f32.mrf.mxu1  ;;  %v1570_v54 = vpack.c.bf16 %v1546_v46, %v1545_v52 }
 0x377   : > { %v1405_v47 = vadd.f32 %v3127_v41, %v1404_v45  ;;  %v1544_v0 = vsel %vm1480_vm0, %v1392_v22, %v1512_v44  ;;  %v1517_v60 = vmul.f32 0.01, %v1413_v49  ;;  %vm1485_vm3 = vcmp.ge.f32.partialorder %v1413_v49, 0.0 }
 0x378   : > { %v2493_v50 = vpop.f32.mrf.mxu1  ;;  %v1569_v51 = vpack.c.bf16 %v1544_v0, %v1543_v48 }
 0x379   : > { %v1416_v53 = vadd.f32 %v2493_v50, %v3127_v41  ;;  %v1515_v56 = vmul.f32 0.01, %v1405_v47  ;;  %vm1483_vm2 = vcmp.ge.f32.partialorder %v1405_v47, 0.0  ;;  %v1549_v8 = vsel %vm1485_vm3, %v1413_v49, %v1517_v60 }
 0x37a   : > { %v1407_v55 = vpop.f32.mrf.mxu1  ;;  %2534 = vmatprep.mubr.bf16.mxu0 %v1569_v51 }
 0x37b   : > { %vm1486_vm1 = vcmp.ge.f32.partialorder %v1416_v53, 0.0  ;;  %v1518_v57 = vmul.f32 0.01, %v1416_v53  ;;  %v1408_v58 = vadd.f32 %v3127_v41, %v1407_v55  ;;  %2535 = vmatmul.mubr.bf16.gmra.mxu0 %v1570_v54  ;;  %v1547_v3 = vsel %vm1483_vm2, %v1405_v47, %v1515_v56 }
 0x37c   : > { %v2496_v61 = vpop.f32.mrf.mxu1 }
 0x37d   : > { %vm1484_vm4 = vcmp.ge.f32.partialorder %v1408_v58, 0.0  ;;  %v1516_v62 = vmul.f32 0.01, %v1408_v58  ;;  %v1550_v1 = vsel %vm1486_vm1, %v1416_v53, %v1518_v57  ;;  %v1429_v5 = vadd.f32 %v2496_v61, %v3127_v41 }
 0x37e   : > { %v1420_v63 = vpop.f32.mrf.mxu1  ;;  %v1572_v10 = vpack.c.bf16 %v1550_v1, %v1549_v8 }
 0x37f   : > { %v1421_v2 = vadd.f32 %v3127_v41, %v1420_v63  ;;  %v1548_v4 = vsel %vm1484_vm4, %v1408_v58, %v1516_v62  ;;  %v1521_v59 = vmul.f32 0.01, %v1429_v5  ;;  %vm1489_vm7 = vcmp.ge.f32.partialorder %v1429_v5, 0.0  ;;  %v3164_v58 = vld [vmem:[%s3337_s2 + $0x100] sm:$0xf] }
 0x380   : > { %v2497_v6 = vpop.f32.mrf.mxu1  ;;  %v1571_v7 = vpack.c.bf16 %v1548_v4, %v1547_v3  ;;  %2324 = vmatprep.mubr.bf16.mxu1 %v3164_v58  ;;  %v1965_v3 = vld [vmem:[%s3338_s3 + $0x5] sm:$0x1] }
 0x381   : > { %v1432_v9 = vadd.f32 %v2497_v6, %v3127_v41  ;;  %v1519_v12 = vmul.f32 0.01, %v1421_v2  ;;  %vm1487_vm6 = vcmp.ge.f32.partialorder %v1421_v2, 0.0  ;;  %v1553_v26 = vsel %vm1489_vm7, %v1429_v5, %v1521_v59 }
 0x382   : > { %v1423_v11 = vpop.f32.mrf.mxu1  ;;  %2538 = vmatprep.mubr.bf16.mxu0 %v1571_v7  ;;  %v2759_v5 = vmov 0  }
 0x383   : > { %vm1490_vm5 = vcmp.ge.f32.partialorder %v1432_v9, 0.0  ;;  %v1522_v13 = vmul.f32 0.01, %v1432_v9  ;;  %v1424_v14 = vadd.f32 %v3127_v41, %v1423_v11  ;;  %2539 = vmatmul.mubr.bf16.gmra.mxu0 %v1572_v10  ;;  %v1551_v20 = vsel %vm1487_vm6, %v1421_v2, %v1519_v12  ;;  %2598 = vset.pattern.permute.xlu0 %v2759_v5 }
 0x384   : > { %v2500_v15 = vpop.f32.mrf.mxu1  ;;  %1968 = vperm.xlu0 %2598, %v1965_v3  }
 0x385   : > { %vm1488_vm8 = vcmp.ge.f32.partialorder %v1424_v14, 0.0  ;;  %v1520_v16 = vmul.f32 0.01, %v1424_v14  ;;  %v1554_v17 = vsel %vm1490_vm5, %v1432_v9, %v1522_v13  ;;  %v1445_v24 = vadd.f32 %v2500_v15, %v3127_v41 }
 0x386   : > { %v1436_v18 = vpop.f32.mrf.mxu1  ;;  %v1574_v28 = vpack.c.bf16 %v1554_v17, %v1553_v26 }
 0x387   : > { %v1437_v19 = vadd.f32 %v3127_v41, %v1436_v18  ;;  %v1552_v21 = vsel %vm1488_vm8, %v1424_v14, %v1520_v16  ;;  %v1525_v33 = vmul.f32 0.01, %v1445_v24  ;;  %vm1493_vm11 = vcmp.ge.f32.partialorder %v1445_v24, 0.0 }
 0x388   : > { %v2501_v23 = vpop.f32.mrf.mxu1  ;;  %v1573_v25 = vpack.c.bf16 %v1552_v21, %v1551_v20 }
 0x389   : > { %v1448_v27 = vadd.f32 %v2501_v23, %v3127_v41  ;;  %v1523_v30 = vmul.f32 0.01, %v1437_v19  ;;  %vm1491_vm10 = vcmp.ge.f32.partialorder %v1437_v19, 0.0  ;;  %v1557_v44 = vsel %vm1493_vm11, %v1445_v24, %v1525_v33 }
 0x38a   : > { %v1439_v29 = vpop.f32.mrf.mxu1  ;;  %2542 = vmatprep.mubr.bf16.mxu0 %v1573_v25 }
 0x38b   : > { %vm1494_vm9 = vcmp.ge.f32.partialorder %v1448_v27, 0.0  ;;  %v1526_v31 = vmul.f32 0.01, %v1448_v27  ;;  %v1440_v32 = vadd.f32 %v3127_v41, %v1439_v29  ;;  %2543 = vmatmul.mubr.bf16.gmra.mxu0 %v1574_v28  ;;  %v1555_v39 = vsel %vm1491_vm10, %v1437_v19, %v1523_v30 }
 0x38c   : > { %v2504_v34 = vpop.f32.mrf.mxu1 }
 0x38d   : > { %vm1492_vm12 = vcmp.ge.f32.partialorder %v1440_v32, 0.0  ;;  %v1524_v35 = vmul.f32 0.01, %v1440_v32  ;;  %v1558_v37 = vsel %vm1494_vm9, %v1448_v27, %v1526_v31  ;;  %v1461_v22 = vadd.f32 %v2504_v34, %v3127_v41 }
 0x38e   : > { %v1452_v36 = vpop.f32.mrf.mxu1  ;;  %v1576_v46 = vpack.c.bf16 %v1558_v37, %v1557_v44 }
 0x38f   : > { %v1453_v38 = vadd.f32 %v3127_v41, %v1452_v36  ;;  %v1556_v40 = vsel %vm1492_vm12, %v1440_v32, %v1524_v35  ;;  %v1529_v50 = vmul.f32 0.01, %v1461_v22  ;;  %vm1497_vm15 = vcmp.ge.f32.partialorder %v1461_v22, 0.0 }
 0x390   : > { %v2505_v42 = vpop.f32.mrf.mxu1  ;;  %v1575_v43 = vpack.c.bf16 %v1556_v40, %v1555_v39 }
 0x391   : > { %v1464_v45 = vadd.f32 %v2505_v42, %v3127_v41  ;;  %v1527_v48 = vmul.f32 0.01, %v1453_v38  ;;  %vm1495_vm14 = vcmp.ge.f32.partialorder %v1453_v38, 0.0  ;;  %v1561_v56 = vsel %vm1497_vm15, %v1461_v22, %v1529_v50 }
 0x392   : > { %v1455_v47 = vpop.f32.mrf.mxu1  ;;  %2546 = vmatprep.mubr.bf16.mxu0 %v1575_v43 }
 0x393   : > { %vm1498_vm13 = vcmp.ge.f32.partialorder %v1464_v45, 0.0  ;;  %v1530_v0 = vmul.f32 0.01, %v1464_v45  ;;  %v1456_v49 = vadd.f32 %v3127_v41, %v1455_v47  ;;  %2547 = vmatmul.mubr.bf16.gmra.mxu0 %v1576_v46  ;;  %v1559_v53 = vsel %vm1495_vm14, %v1453_v38, %v1527_v48  ;;  %v3169_v41 = vld [vmem:[%s3338_s3 + $0x4] ss:$0 sm:$0xff] }
 0x395   : > { %vm1496_vm0 = vcmp.ge.f32.partialorder %v1456_v49, 0.0  ;;  %v1528_v51 = vmul.f32 0.01, %v1456_v49  ;;  %v1562_v52 = vsel %vm1498_vm13, %v1464_v45, %v1530_v0 }
 0x396   : > { %v1578_v57 = vpack.c.bf16 %v1562_v52, %v1561_v56 }
 0x397   : > { %v1560_v54 = vsel %vm1496_vm0, %v1456_v49, %v1528_v51 }
 0x398   : > { %v1577_v55 = vpack.c.bf16 %v1560_v54, %v1559_v53 }
 0x39a   : > { %2550 = vmatprep.mubr.bf16.mxu0 %v1577_v55 }
 0x39b   : > { %2551 = vmatmul.mubr.bf16.gmra.mxu0 %v1578_v57 }
 0x423   : > { %v2524_v60 = vpop.f32.mrf.mxu0 }
 0x424   : > { %v1692_v61 = vadd.f32 %v2524_v60, %v3169_v41 }
 0x425   : > { %v1683_v62 = vpop.f32.mrf.mxu0 }
 0x426   : > { %v1684_v63 = vadd.f32 %v3169_v41, %v1683_v62  ;;  %v1844_v1 = vmul.f32 0.01, %v1692_v61  ;;  %vm1812_vm1 = vcmp.ge.f32.partialorder %v1692_v61, 0.0 }
 0x427   : > { %v2525_v2 = vpop.f32.mrf.mxu0 }
 0x428   : > { %v1695_v4 = vadd.f32 %v2525_v2, %v3169_v41  ;;  %v1842_v7 = vmul.f32 0.01, %v1684_v63  ;;  %v3179_v10 = vsel %vm1812_vm1, %v1692_v61, %v1844_v1  ;;  %vm1810_vm3 = vcmp.ge.f32.partialorder %v1684_v63, 0.0 }
 0x429   : > { %v1686_v6 = vpop.f32.mrf.mxu0 }
 0x42a   : > { %vm1813_vm2 = vcmp.ge.f32.partialorder %v1695_v4, 0.0  ;;  %v1845_v8 = vmul.f32 0.01, %v1695_v4  ;;  %v1687_v9 = vadd.f32 %v3169_v41, %v1686_v6  ;;  %v3186_v16 = vsel %vm1810_vm3, %v1684_v63, %v1842_v7 }
 0x42b   : > { %v2528_v11 = vpop.f32.mrf.mxu0 }
 0x42c   : > { %v3181_v12 = vsel %vm1813_vm2, %v1695_v4, %v1845_v8  ;;  %vm1811_vm4 = vcmp.ge.f32.partialorder %v1687_v9, 0.0  ;;  %v1843_v13 = vmul.f32 0.01, %v1687_v9  ;;  %v1708_v14 = vadd.f32 %v2528_v11, %v3169_v41 }
 0x42d   : > { %v1909_v59 = vpack.c.bf16 %v3181_v12, %v3179_v10  ;;  %v1699_v15 = vpop.f32.mrf.mxu0 }
 0x42e   : > { %v3188_v18 = vsel %vm1811_vm4, %v1687_v9, %v1843_v13  ;;  %v1700_v17 = vadd.f32 %v3169_v41, %v1699_v15  ;;  %v1848_v21 = vmul.f32 0.01, %v1708_v14  ;;  %vm1816_vm5 = vcmp.ge.f32.partialorder %v1708_v14, 0.0 }
 0x42f   : > { %v1908_v19 = vpack.c.bf16 %v3188_v18, %v3186_v16  ;;  %v2529_v20 = vpop.f32.mrf.mxu0 }
 0x430   : > { %v1711_v24 = vadd.f32 %v2529_v20, %v3169_v41  ;;  %v1846_v25 = vmul.f32 0.01, %v1700_v17  ;;  %vm1814_vm7 = vcmp.ge.f32.partialorder %v1700_v17, 0.0  ;;  %v3197_v29 = vsel %vm1816_vm5, %v1708_v14, %v1848_v21 }
 0x431   : > { %v1702_v23 = vpop.f32.mrf.mxu0 }
 0x432   : > { %vm1817_vm6 = vcmp.ge.f32.partialorder %v1711_v24, 0.0  ;;  %v1849_v26 = vmul.f32 0.01, %v1711_v24  ;;  %v1703_v27 = vadd.f32 %v3169_v41, %v1702_v23  ;;  %v3205_v34 = vsel %vm1814_vm7, %v1700_v17, %v1846_v25 }
 0x433   : > { %v3195_v28 = vpop.f32.mrf.mxu0 }
 0x434   : > { %v3199_v30 = vsel %vm1817_vm6, %v1711_v24, %v1849_v26  ;;  %vm1815_vm8 = vcmp.ge.f32.partialorder %v1703_v27, 0.0  ;;  %v1847_v31 = vmul.f32 0.01, %v1703_v27 }
 0x435   : > { %v1911_v32 = vpack.c.bf16 %v3199_v30, %v3197_v29  ;;  %v3203_v33 = vpop.f32.mrf.mxu0  ;;  %v1979_v30 = vlaneseq }
 0x436   : > { %v3207_v35 = vsel %vm1815_vm8, %v1703_v27, %v1847_v31 }
 0x437   : > { %v1910_v36 = vpack.c.bf16 %v3207_v35, %v3205_v34  ;;  %v3211_v37 = vpop.f32.mrf.mxu0  ;;  %v1980_v34 = vshrl.u32 %v1979_v30, 7 }
 0x439   : > { %v3213_v38 = vpop.f32.mrf.mxu0 }
 0x43b   : > { %v2536_v39 = vpop.f32.mrf.mxu0 }
 0x43c   : > { %v1740_v11 = vadd.f32 %v2536_v39, %v3169_v41 }
 0x43d   : > { %v1731_v40 = vpop.f32.mrf.mxu0 }
 0x43e   : > { %vm1824_vm14 = vcmp.ge.f32.partialorder %v1740_v11, 0.0  ;;  %v1856_v24 = vmul.f32 0.01, %v1740_v11 }
 0x43f   : > { %v2537_v22 = vpop.f32.mrf.mxu0 }
 0x440   : > { %v1743_v7 = vadd.f32 %v2537_v22, %v3169_v41 }
 0x441   : > { %v1734_v42 = vpop.f32.mrf.mxu0 }
 0x442   : > { %v1857_v15 = vmul.f32 0.01, %v1743_v7  ;;  %vm1825_vm13 = vcmp.ge.f32.partialorder %v1743_v7, 0.0  ;;  %v1735_v39 = vadd.f32 %v3169_v41, %v1734_v42 }
 0x443   : > { %v2540_v43 = vpop.f32.mrf.mxu0 }
 0x444   : > { %v1756_v44 = vadd.f32 %v2540_v43, %v3169_v41  ;;  %v1889_v31 = vsel %vm1825_vm13, %v1743_v7, %v1857_v15  ;;  %vm1823_vm3 = vcmp.ge.f32.partialorder %v1735_v39, 0.0 }
 0x445   : > { %v1747_v45 = vpop.f32.mrf.mxu0 }
 0x446   : > { %v1748_v46 = vadd.f32 %v3169_v41, %v1747_v45  ;;  %v1860_v48 = vmul.f32 0.01, %v1756_v44  ;;  %vm1828_vm9 = vcmp.ge.f32.partialorder %v1756_v44, 0.0 }
 0x447   : > { %v2541_v47 = vpop.f32.mrf.mxu0 }
 0x448   : > { %v1759_v0 = vadd.f32 %v2541_v47, %v3169_v41  ;;  %v1858_v50 = vmul.f32 0.01, %v1748_v46  ;;  %vm1826_vm11 = vcmp.ge.f32.partialorder %v1748_v46, 0.0  ;;  %v3221_v55 = vsel %vm1828_vm9, %v1756_v44, %v1860_v48 }
 0x449   : > { %v1750_v49 = vpop.f32.mrf.mxu0  ;;  %v1732_v47 = vadd.f32 %v3169_v41, %v1731_v40  ;;  %v1727_v40 = vadd.f32 %v3211_v37, %v3169_v41 }
 0x44a   : > { %vm1829_vm10 = vcmp.ge.f32.partialorder %v1759_v0, 0.0  ;;  %v1861_v51 = vmul.f32 0.01, %v1759_v0  ;;  %v1751_v52 = vadd.f32 %v3169_v41, %v1750_v49  ;;  %v3229_v61 = vsel %vm1826_vm11, %v1748_v46, %v1858_v50 }
 0x44b   : > { %v3219_v53 = vpop.f32.mrf.mxu0  ;;  %v1888_v46 = vsel %vm1824_vm14, %v1740_v11, %v1856_v24  ;;  %vm1822_vm5 = vcmp.ge.f32.partialorder %v1732_v47, 0.0  ;;  %v1724_v11 = vadd.f32 %v3195_v28, %v3169_v41  ;;  %vm1821_vm7 = vcmp.ge.f32.partialorder %v1727_v40, 0.0 }
 0x44c   : > { %vm1827_vm12 = vcmp.ge.f32.partialorder %v1751_v52, 0.0  ;;  %v1859_v54 = vmul.f32 0.01, %v1751_v52  ;;  %v3223_v56 = vsel %vm1829_vm10, %v1759_v0, %v1861_v51  ;;  %v1915_v0 = vpack.c.bf16 %v1889_v31, %v1888_v46 }
 0x44d   : > { %v3225_v57 = vpop.f32.mrf.mxu0  ;;  %v1917_v60 = vpack.c.bf16 %v3223_v56, %v3221_v55  ;;  %vm1820_vm9 = vcmp.ge.f32.partialorder %v1724_v11, 0.0 }
 0x44e   : > { %v3231_v62 = vsel %vm1827_vm12, %v1751_v52, %v1859_v54  ;;  %v1855_v52 = vmul.f32 0.01, %v1735_v39 }
 0x44f   : > { %v3233_v63 = vpop.f32.mrf.mxu0  ;;  %v1916_v1 = vpack.c.bf16 %v3231_v62, %v3229_v61 }
 0x450   : > { %v1775_v28 = vadd.f32 %v3233_v63, %v3169_v41 }
 0x451   : > { %v3237_v2 = vpop.f32.mrf.mxu0 }
 0x452   : > { %vm1833_vm12 = vcmp.ge.f32.partialorder %v1775_v28, 0.0 }
 0x453   : > { %v2548_v3 = vpop.f32.mrf.mxu0 }
 0x454   : > { %v1788_v49 = vadd.f32 %v2548_v3, %v3169_v41 }
 0x455   : > { %v1779_v4 = vpop.f32.mrf.mxu0 }
 0x456   : > { %v1868_v7 = vmul.f32 0.01, %v1788_v49  ;;  %vm1836_vm6 = vcmp.ge.f32.partialorder %v1788_v49, 0.0  ;;  %v1780_v15 = vadd.f32 %v3169_v41, %v1779_v4 }
 0x457   : > { %v2549_v5 = vpop.f32.mrf.mxu0 }
 0x458   : > { %v1791_v22 = vadd.f32 %v2549_v5, %v3169_v41  ;;  %v1854_v5 = vmul.f32 0.01, %v1732_v47  ;;  %v1866_v37 = vmul.f32 0.01, %v1780_v15  ;;  %vm1834_vm10 = vcmp.ge.f32.partialorder %v1780_v15, 0.0 }
 0x459   : > { %v1782_v6 = vpop.f32.mrf.mxu0 }
 0x45a   : > { %v1869_v54 = vmul.f32 0.01, %v1791_v22  ;;  %vm1837_vm4 = vcmp.ge.f32.partialorder %v1791_v22, 0.0  ;;  %v1783_v3 = vadd.f32 %v3169_v41, %v1782_v6 }
 0x45b   : > { %v2552_v8 = vpop.f32.mrf.mxu0 }
 0x45c   : > { %v1804_v9 = vadd.f32 %v2552_v8, %v3169_v41  ;;  %v1887_v8 = vsel %vm1823_vm3, %v1735_v39, %v1855_v52  ;;  %v1867_v24 = vmul.f32 0.01, %v1783_v3  ;;  %vm1835_vm8 = vcmp.ge.f32.partialorder %v1783_v3, 0.0 }
 0x45d   : > { %v1795_v13 = vpop.f32.mrf.mxu0  ;;  %v1772_v39 = vadd.f32 %v3219_v53, %v3169_v41  ;;  %v1764_v53 = vadd.f32 %v3169_v41, %v3225_v57 }
 0x45e   : > { %v1796_v14 = vadd.f32 %v3169_v41, %v1795_v13  ;;  %v1872_v20 = vmul.f32 0.01, %v1804_v9  ;;  %vm1840_vm15 = vcmp.ge.f32.partialorder %v1804_v9, 0.0  ;;  %v1886_v13 = vsel %vm1822_vm5, %v1732_v47, %v1854_v5 }
 0x45f   : > { %v2553_v17 = vpop.f32.mrf.mxu0  ;;  %v1899_v4 = vsel %vm1835_vm8, %v1783_v3, %v1867_v24  ;;  %v1864_v63 = vmul.f32 0.01, %v1772_v39  ;;  %vm1832_vm14 = vcmp.ge.f32.partialorder %v1772_v39, 0.0  ;;  %v1862_v52 = vmul.f32 0.01, %v1764_v53 }
 0x460   : > { %v1807_v21 = vadd.f32 %v2553_v17, %v3169_v41  ;;  %v1870_v25 = vmul.f32 0.01, %v1796_v14  ;;  %vm1838_vm1 = vcmp.ge.f32.partialorder %v1796_v14, 0.0  ;;  %v1904_v44 = vsel %vm1840_vm15, %v1804_v9, %v1872_v20 }
 0x461   : > { %v1798_v23 = vpop.f32.mrf.mxu0  ;;  %v1901_v9 = vsel %vm1837_vm4, %v1791_v22, %v1869_v54  ;;  %v1900_v17 = vsel %vm1836_vm6, %v1788_v49, %v1868_v7  ;;  %v1853_v20 = vmul.f32 0.01, %v1727_v40  ;;  %v1898_v22 = vsel %vm1834_vm10, %v1780_v15, %v1866_v37 }
 0x462   : > { %vm1841_vm0 = vcmp.ge.f32.partialorder %v1807_v21, 0.0  ;;  %v1873_v26 = vmul.f32 0.01, %v1807_v21  ;;  %v1799_v27 = vadd.f32 %v3169_v41, %v1798_v23  ;;  %v1902_v50 = vsel %vm1838_vm1, %v1796_v14, %v1870_v25 }
 0x463   : > { %v1914_v14 = vpack.c.bf16 %v1887_v8, %v1886_v13  ;;  %v1852_v23 = vmul.f32 0.01, %v1724_v11  ;;  %v1885_v6 = vsel %vm1821_vm7, %v1727_v40, %v1853_v20  ;;  %v1719_v25 = vadd.f32 %v3169_v41, %v3213_v38 }
 0x464   : > { %vm1839_vm2 = vcmp.ge.f32.partialorder %v1799_v27, 0.0  ;;  %v1871_v43 = vmul.f32 0.01, %v1799_v27  ;;  %v1905_v45 = vsel %vm1841_vm0, %v1807_v21, %v1873_v26  ;;  %v1921_v21 = vpack.c.bf16 %v1901_v9, %v1900_v17 }
 0x465   : > { %v1923_v48 = vpack.c.bf16 %v1905_v45, %v1904_v44  ;;  %v1884_v26 = vsel %vm1820_vm9, %v1724_v11, %v1852_v23  ;;  %v1920_v44 = vpack.c.bf16 %v1899_v4, %v1898_v22  ;;  %vm1819_vm11 = vcmp.ge.f32.partialorder %v1719_v25, 0.0 }
 0x466   : > { %v1903_v51 = vsel %vm1839_vm2, %v1799_v27, %v1871_v43  ;;  %v1716_v27 = vadd.f32 %v3169_v41, %v3203_v33  ;;  %v1913_v31 = vpack.c.bf16 %v1885_v6, %v1884_v26  ;;  %v1851_v43 = vmul.f32 0.01, %v1719_v25 }
 0x467   : > { %2308 = vmatprep.subr.bf16.mxu1 %v1923_v48  ;;  %v1922_v42 = vpack.c.bf16 %v1903_v51, %v1902_v50  ;;  %v1865_v45 = vmul.f32 0.01, %v1775_v28  ;;  %v1767_v33 = vadd.f32 %v3169_v41, %v3237_v2  ;;  %v1896_v49 = vsel %vm1832_vm14, %v1772_v39, %v1864_v63 }
 0x468   : > { %2309 = vmatpush3.bf16.xpose.msra.mxu1 %v1915_v0  ;;  %v1850_v38 = vmul.f32 0.01, %v1716_v27  ;;  %vm1818_vm13 = vcmp.ge.f32.partialorder %v1716_v27, 0.0  ;;  %v1883_v46 = vsel %vm1819_vm11, %v1719_v25, %v1851_v43  ;;  %vm1830_vm0 = vcmp.ge.f32.partialorder %v1764_v53, 0.0 }
 0x469   : > { %2310 = vmatprep.subr.bf16.mxu1 %v1922_v42  ;;  %v1897_v47 = vsel %vm1833_vm12, %v1775_v28, %v1865_v45  ;;  %v1863_v51 = vmul.f32 0.01, %v1767_v33  ;;  %vm1831_vm15 = vcmp.ge.f32.partialorder %v1767_v33, 0.0  ;;  %v1894_v54 = vsel %vm1830_vm0, %v1764_v53, %v1862_v52 }
 0x46a   : > { %v1882_v48 = vsel %vm1818_vm13, %v1716_v27, %v1850_v38  ;;  %v1919_v50 = vpack.c.bf16 %v1897_v47, %v1896_v49  ;;  %v2760_v41 = vmov 1966171168   ;;  %vm1993_vm1 = vcmp.lt.s32.totalorder %v1979_v30, 256 }
 0x46b   : > { %v1912_v0 = vpack.c.bf16 %v1883_v46, %v1882_v48  ;;  %v1895_v42 = vsel %vm1831_vm15, %v1767_v33, %v1863_v51  ;;  %v1977_v29 = vunpack.c.l.s4 %v2760_v41 }
 0x46c   : > { %v1918_v5 = vpack.c.bf16 %v1895_v42, %v1894_v54 }
 0x470   : > { %2311 = vmatpush3.bf16.xpose.msra.mxu1 %v1914_v14 }
 0x471   : > { %2312 = vmatprep.subr.bf16.mxu1 %v1921_v21 }
 0x478   : > { %2313 = vmatpush3.bf16.xpose.msra.mxu1 %v1913_v31 }
 0x479   : > { %2314 = vmatprep.subr.bf16.mxu1 %v1920_v44 }
 0x480   : > { %2315 = vmatpush3.bf16.xpose.msra.mxu1 %v1912_v0 }
 0x481   : > { %2316 = vmatprep.subr.bf16.mxu1 %v1919_v50 }
 0x488   : > { %2317 = vmatpush3.bf16.xpose.msra.mxu1 %v1911_v32  ;;  %v1978_v32 = vunpack.c.0.s8 %v1977_v29 }
 0x489   : > { %2318 = vmatprep.subr.bf16.mxu1 %v1918_v5 }
 0x48a   : > { %v1981_v55 = vsub.s32 %v1978_v32, %v1980_v34 }
 0x490   : > { %2319 = vmatpush3.bf16.xpose.msra.mxu1 %v1910_v36  ;;  %v1969_v36 = vpop.permute.xlu0 %1968 }
 0x491   : > { %2320 = vmatprep.subr.bf16.mxu1 %v1917_v60 }
 0x498   : > { %2321 = vmatpush3.bf16.xpose.msra.mxu1 %v1909_v59 }
 0x499   : > { %2322 = vmatprep.subr.bf16.mxu1 %v1916_v1 }
 0x4a0   : > { %2323 = vmatpush3.bf16.xpose.msra.mxu1 %v1908_v19 }
 0x4a7   : > { %2325 = vmatmul.mubr.bf16.vlgmr.msra.gmra.mxu1 %v3164_v58 }
 0x567   : > { %v1958_v35 = vpop.f32.mrf.mxu1 }
 0x568   : > { %v1971_v12 = vadd.f32 %v1969_v36, %v1958_v35 }
 0x569   : > { %v1960_v10 = vpop.f32.mrf.mxu1 }
 0x56a   : > { %v1972_v59 = vadd.f32 %v1969_v36, %v1960_v10 }
 0x56b   : > { %v1962_v56 = vpop.f32.mrf.mxu1 }
 0x56c   : > { %v1975_v57 = vcombine.low %v1971_v12, %v1972_v59 }
 0x56d   : > { %v1963_v60 = vpop.f32.mrf.mxu1 }
 0x56e   : > { %v1982_v16 = vrot.slane %v1975_v57, %v1981_v55  ;;  %2003 = sbr.rel (!%p2825_p5) target bundleno = 1421 (0x58d), region = 40 }
 0x570   : > { %v1989_v18 = vrot.slane %v1982_v16, %v1981_v55 }
 0x572   : > { %1995 = vst.msk [vmem:[%s203_s11] sm:$0x3] %vm1993_vm1, %v1989_v18 }
 0x573   : > { %s3347_s14 = smov (!%p2006_p11, %s2005_s14), 2 }
 0x574   : > { %s3293_s20 = sshll.u32 %s3347_s14, 4 }
 0x575   : > { %s2010_s22 = ssub.s32 32, %s3293_s20 }
 0x576   : > { %2011 = vsyncadd %s3288_s12, %s2010_s22  ;;  %p2189_p12 = scmp.ne.s32.totalorder %s3293_s20, 0  ;;  %s2014_s25 = scalar_lea.hbm %s3339_s4, %s2839_s29 }
 0x577   : > { %s2016_s28 = sshll.u32 %s203_s11, 4  ;;  %s2761_s30 = smov [#allocation2]   ;;  %s2017_s28 = int_to_ptr.vmem [resolvable:$true] %s2016_s28 }
 0x578   : > { %s2697_s19 = scalar_lea.vmem %s2017_s28, %s3293_s20  ;;  %s2701_s5 = sshll.u32 %s2761_s30, 4  ;;  %s2702_s5 = int_to_ptr.vmem [resolvable:$false] %s2701_s5 }
 0x579   : > { %p2698_p13 = scmp.ne.s32.totalorder %s2017_s28, %s2697_s19  ;;  %s2703_s6 = scalar_lea.vmem %s2702_s5, 64 }
 0x57a   : > { %p2704_p2 = scmp.lt.s32.totalorder %s2017_s28, %s2702_s5  ;;  %p2705_p3 = scmp.lt.s32.totalorder %s2703_s6, %s2697_s19 }
 0x57b   : > { %p2699_p0 = pnand %p2698_p13, %p2189_p12 }
 0x57c   : > { %p2706_p4 = por %p2705_p3, %p2704_p2 }
 0x57d   : > { %p2700_p1 = pneg %p2699_p0 }
 0x57f   : > { %p2707_p5 = pnand %p2706_p4, %p2700_p1 }
 0x581   : > { %2710 = shalt.err (!%p2707_p5)
}
 0x582   : > { %s2711_s7 = scalar_lea.hbm %s2014_s25, %s3293_s20  ;;  %s2715_s9 = scalar_lea.hbm %s3339_s4, 48 }
 0x583   : > { %p2712_p7 = scmp.ne.s32.totalorder %s2014_s25, %s2711_s7  ;;  %p2716_p10 = scmp.lt.s32.totalorder %s2014_s25, %s3339_s4 }
 0x584   : > { %p2717_p11 = scmp.lt.s32.totalorder %s2715_s9, %s2711_s7 }
 0x585   : > { %p2713_p8 = pnand %p2712_p7, %p2189_p12 }
 0x586   : > { %p2718_p13 = por %p2717_p11, %p2716_p10 }
 0x587   : > { %p2714_p9 = pneg %p2713_p8 }
 0x589   : > { %p2719_p0 = pnand %p2718_p13, %p2714_p9 }
 0x58b   : > { %2722 = shalt.err (!%p2719_p0)
}
 0x58c   : > { %2019 = dma.vmem_to_hbm [thread:$0]  (%p2189_p12), %s2017_s28, %s3293_s20, %s2014_s25, %s3288_s12  }
 0x58d PF: > { %p2563_p1 = scmp.ge.s32.totalorder %s2757_s18, 2  ;;  %s2028_s13 = sand.u32 1, %s2745_s15  }
 0x58e   : > { %s2029_s14 = scalar_lea.sflag [#allocation3], %s2028_s13 }
 0x58f   : > { %p2560_p2 = pnand %p2563_p1, %p2829_p6 }
 0x591   : > { %p2561_p3 = pneg %p2560_p2 }
 0x593   : > { %2740 = dma.done.wait (%p2561_p3), %s2029_s14, 32  }
 0x594   : > { %2742 = vsyncadd (%p2561_p3), %s2029_s14, 4294967264  ;;  %p14_p4 = scmp.ge.s32.totalorder %s2812_s21, 4   ;;  %s3342_s15 = smov %s2749_s16 }
 0x595   : > { %s3343_s16 = smov %s2753_s17  ;;  %s3344_s17 = smov %s2823_s24 }
 0x596   : > { %s3345_s18 = smov %s2812_s21  ;;  %16 = sbr.rel (!%p14_p4) target bundleno = 3 (0x3), region = 75 }
 0x59b   :  { %2034 = vsyncpa [#allocation3], 1 }
 0x59c   :  { %2036 = vsyncpa [#allocation3 + $0x1], 1 }

</bundles_post_ra>
